<compile_context>
chip_gen: v6e
topology: v6e:2x2x1
jax: 0.10.0
libtpu: 0.0.40
codegen_flags: <defaults>
</compile_context>

<pallas_src>
from functools import partial

import jax
import jax.numpy as jnp
from jax.experimental import pallas as pl
from jax.experimental.pallas import tpu as pltpu


def _round_up(x, m):
    return ((x + m - 1) // m) * m


# ----------------------------------------------------------------------------
# Pallas kernel: single invocation, whole forward (gather + LSTM + projection).
# ----------------------------------------------------------------------------
def _char_decoder_kernel(
    ids_ref,      # (L*B, 1)   int32 char ids (row t*B+b = step t, batch b)
    tab_ref,      # (Vp, 4H)   fused   emb @ W_ih^T + (b_ih+b_hh), vocab padded to 128
    w_hh_ref,     # (H, 4H)    hidden->gate weights, gate order [i|f|g|o] along lanes
    w_out_ref,    # (H, Vp)    output projection weight (transposed, V padded to 128)
    b_out_ref,    # (1, Vp)    output projection bias (padded)
    h0_ref,       # (B, H)     initial hidden state
    c0_ref,       # (B, H)     initial cell state
    scores_ref,   # (L*B, Vp)  out: scores, lane/sublane-dense slab
    h_out_ref,    # (B, H)     out: final hidden state
    c_out_ref,    # (B, H)     out: final cell state
):
    LB = ids_ref.shape[0]
    B, H = h0_ref.shape
    L = LB // B
    Vp = tab_ref.shape[0]
    HI = jax.lax.Precision.HIGHEST

    # --- Fused embedding + input projection (+ bias) gather -------------------
    # one-hot (LB, Vp) @ (Vp, 4H) — exact 128x128 MXU tile, exact values (1.0 * x).
    ids = ids_ref[...]                                             # (LB, 1) int32
    lanes = jax.lax.broadcasted_iota(jnp.int32, (LB, Vp), 1)
    onehot = (lanes == ids).astype(jnp.float32)
    xw = jnp.dot(onehot, tab_ref[...], precision=HI,
                 preferred_element_type=jnp.float32)               # (LB, 4H)

    w_hh = w_hh_ref[...]                                           # resident in vregs

    # Hoisted lane mask selecting the tanh ('g') gate band [2H, 3H).
    gl = jax.lax.broadcasted_iota(jnp.int32, (B, 4 * H), 1)
    g_band = (gl >= 2 * H) & (gl < 3 * H)

    # --- Serial LSTM recurrence, fully unrolled, register-resident carries ----
    h = h0_ref[...]
    c = c0_ref[...]
    h_steps = []
    for t in range(L):                                             # static L
        gates = xw[t * B:(t + 1) * B, :] + jnp.dot(
            h, w_hh, precision=HI, preferred_element_type=jnp.float32)
        sig = jax.nn.sigmoid(gates)            # EUP pass 1, full 4H width
        tnh = jnp.tanh(gates)                  # EUP pass 2, full 4H width
        act = jnp.where(g_band, tnh, sig)      # select tanh band, sigmoid elsewhere
        i_g = act[:, 0 * H:1 * H]
        f_g = act[:, 1 * H:2 * H]
        g_g = act[:, 2 * H:3 * H]
        o_g = act[:, 3 * H:4 * H]
        c = f_g * c + i_g * g_g
        h = o_g * jnp.tanh(c)                  # EUP pass 3
        h_steps.append(h)

    h_out_ref[...] = h
    c_out_ref[...] = c

    # --- Deferred vocab projection: one (LB, H) @ (H, Vp) matmul, dense store --
    h_all = jnp.concatenate(h_steps, axis=0)                       # (LB, H)
    scores = jnp.dot(h_all, w_out_ref[...], precision=HI,
                     preferred_element_type=jnp.float32) + b_out_ref[...]
    scores_ref[...] = scores                                       # (LB, Vp)


# ----------------------------------------------------------------------------
# One-time parameter re-layout (call at parameter-load time, NOT per forward).
# ----------------------------------------------------------------------------
def prepare_params(emb_table, w_ih, w_hh, b_ih, b_hh, w_proj, b_proj):
    """Fold torch-style params into kernel layout.

    emb_table : (V, E)  nn.Embedding weight (padding_idx row already zeroed)
    w_ih      : (4H, E) nn.LSTM weight_ih_l0, gate order [i,f,g,o]
    w_hh      : (4H, H) nn.LSTM weight_hh_l0
    b_ih,b_hh : (4H,)
    w_proj    : (V, H)  nn.Linear weight
    b_proj    : (V,)
    """
    H = w_hh.shape[1]
    V = w_proj.shape[0]
    Vp = _round_up(V, 128)
    HI = jax.lax.Precision.HIGHEST

    w_ih_t = jnp.asarray(w_ih, jnp.float32).T                      # (E, 4H)
    b = (jnp.asarray(b_ih, jnp.float32)
         + jnp.asarray(b_hh, jnp.float32)).reshape(1, 4 * H)

    # Fused embedding + input projection + bias lookup table (padding row = b,
    # identical to the x=0 path since the pad embedding row is zero).
    tab = jnp.dot(jnp.asarray(emb_table, jnp.float32), w_ih_t, precision=HI) + b
    tab = jnp.zeros((Vp, 4 * H), jnp.float32).at[:V, :].set(tab)   # (Vp, 4H)

    w_hh_k = jnp.asarray(w_hh, jnp.float32).T                      # (H, 4H)

    w_out = jnp.zeros((H, Vp), jnp.float32).at[:, :V].set(
        jnp.asarray(w_proj, jnp.float32).T)                        # (H, Vp)
    b_out = jnp.zeros((1, Vp), jnp.float32).at[:, :V].set(
        jnp.asarray(b_proj, jnp.float32))                          # (1, Vp)
    return tab, w_hh_k, w_out, b_out


# ----------------------------------------------------------------------------
# Forward wrapper: single pallas_call, everything else is reshape/slice.
# ----------------------------------------------------------------------------
@partial(jax.jit, static_argnames=("vocab_size",))
def char_decoder_forward(input_ids, xw_table, w_hh_k, w_out, b_out, h0, c0,
                         *, vocab_size):
    """Equivalent of CharDecoder.forward.

    input_ids : (L, B) int32
    xw_table  : (Vp, 4H)   (from prepare_params)
    w_hh_k    : (H, 4H)
    w_out     : (H, Vp)
    b_out     : (1, Vp)
    h0, c0    : (1, B, H)

    returns scores (L, B, V), (h_n, c_n) each (1, B, H)
    """
    L, B = input_ids.shape
    H = h0.shape[-1]
    Vp = w_out.shape[1]

    ids2 = input_ids.reshape(L * B, 1).astype(jnp.int32)

    scores_flat, h_n, c_n = pl.pallas_call(
        _char_decoder_kernel,
        out_shape=(
            jax.ShapeDtypeStruct((L * B, Vp), jnp.float32),
            jax.ShapeDtypeStruct((B, H), jnp.float32),
            jax.ShapeDtypeStruct((B, H), jnp.float32),
        ),
        grid_spec=pltpu.PrefetchScalarGridSpec(
            num_scalar_prefetch=0,
            grid=(1,),                                          # single invocation
            in_specs=[
                pl.BlockSpec((L * B, 1), lambda i: (0, 0)),     # ids
                pl.BlockSpec((Vp, 4 * H), lambda i: (0, 0)),    # fused xw table
                pl.BlockSpec((H, 4 * H), lambda i: (0, 0)),     # w_hh
                pl.BlockSpec((H, Vp), lambda i: (0, 0)),        # w_out (padded)
                pl.BlockSpec((1, Vp), lambda i: (0, 0)),        # b_out (padded)
                pl.BlockSpec((B, H), lambda i: (0, 0)),         # h0
                pl.BlockSpec((B, H), lambda i: (0, 0)),         # c0
            ],
            out_specs=[
                pl.BlockSpec((L * B, Vp), lambda i: (0, 0)),    # scores slab
                pl.BlockSpec((B, H), lambda i: (0, 0)),         # h_n
                pl.BlockSpec((B, H), lambda i: (0, 0)),         # c_n
            ],
        ),
        compiler_params=pltpu.CompilerParams(
            dimension_semantics=("arbitrary",),
        ),
    )(ids2, xw_table, w_hh_k, w_out, b_out, h0[0], c0[0])

    scores = scores_flat.reshape(L, B, Vp)[:, :, :vocab_size]       # drop vocab pad
    return scores, (h_n[None, ...], c_n[None, ...])


# ----------------------------------------------------------------------------
# Pure-JAX reference of the torch semantics (for correctness check).
# ----------------------------------------------------------------------------
def ref_forward(input_ids, emb_table, w_ih, w_hh, b_ih, b_hh, w_proj, b_proj,
                h0, c0):
    H = w_hh.shape[1]
    HI = jax.lax.Precision.HIGHEST
    char_emb = jnp.take(emb_table, input_ids, axis=0)  # (L, B, E)

    def step(carry, x_t):
        h, c = carry
        gates = (jnp.dot(x_t, w_ih.T, precision=HI) + b_ih
                 + jnp.dot(h, w_hh.T, precision=HI) + b_hh)
        i_g = jax.nn.sigmoid(gates[:, 0 * H:1 * H])
        f_g = jax.nn.sigmoid(gates[:, 1 * H:2 * H])
        g_g = jnp.tanh(gates[:, 2 * H:3 * H])
        o_g = jax.nn.sigmoid(gates[:, 3 * H:4 * H])
        c_new = f_g * c + i_g * g_g
        h_new = o_g * jnp.tanh(c_new)
        return (h_new, c_new), h_new

    (h_n, c_n), outs = jax.lax.scan(step, (h0[0], c0[0]), char_emb)
    scores = jnp.dot(outs, w_proj.T, precision=HI) + b_proj
    return scores, (h_n[None, ...], c_n[None, ...])


# ----------------------------------------------------------------------------
# Main
# ----------------------------------------------------------------------------
if __name__ == "__main__":
    # Small shapes implied by the module.
    L = 8            # word length (sequence length)
    B = 4            # batch size
    E = 50           # char_embedding_size (module default)
    H = 32           # hidden_size
    V = 30           # len(target_vocab.char2id)
    CHAR_PAD = 0     # target_vocab.char_pad (padding_idx of the embedding)

    key = jax.random.PRNGKey(0)
    keys = jax.random.split(key, 10)

    # Deterministic synthetic parameters (shapes match the torch module).
    emb_table = jax.random.normal(keys[0], (V, E), jnp.float32) * 0.1
    emb_table = emb_table.at[CHAR_PAD].set(0.0)               # padding_idx row = 0
    w_ih = jax.random.normal(keys[1], (4 * H, E), jnp.float32) * 0.1
    w_hh = jax.random.normal(keys[2], (4 * H, H), jnp.float32) * 0.1
    b_ih = jax.random.normal(keys[3], (4 * H,), jnp.float32) * 0.1
    b_hh = jax.random.normal(keys[4], (4 * H,), jnp.float32) * 0.1
    w_proj = jax.random.normal(keys[5], (V, H), jnp.float32) * 0.1
    b_proj = jax.random.normal(keys[6], (V,), jnp.float32) * 0.1

    # Inputs.
    input_ids = jax.random.randint(keys[7], (L, B), 0, V, dtype=jnp.int32)
    h0 = jax.random.normal(keys[8], (1, B, H), jnp.float32) * 0.1
    c0 = jax.random.normal(keys[9], (1, B, H), jnp.float32) * 0.1

    # One-time weight re-layout + embedding/bias fusion (parameter-load time).
    xw_table, w_hh_k, w_out, b_out = prepare_params(
        emb_table, w_ih, w_hh, b_ih, b_hh, w_proj, b_proj)
    jax.block_until_ready((xw_table, w_hh_k, w_out, b_out))

    scores, (h_n, c_n) = char_decoder_forward(
        input_ids, xw_table, w_hh_k, w_out, b_out, h0, c0, vocab_size=V)
    jax.block_until_ready((scores, h_n, c_n))

    # Correctness vs. pure-JAX reference of the torch semantics.
    r_scores, (r_h, r_c) = ref_forward(
        input_ids, emb_table, w_ih, w_hh, b_ih, b_hh, w_proj, b_proj, h0, c0)
    assert scores.shape == (L, B, V)
    assert h_n.shape == (1, B, H) and c_n.shape == (1, B, H)
    assert jnp.allclose(scores, r_scores, atol=1e-4, rtol=1e-4)
    assert jnp.allclose(h_n, r_h, atol=1e-4, rtol=1e-4)
    assert jnp.allclose(c_n, r_c, atol=1e-4, rtol=1e-4)

    # TODO(synk): train_forward (cross-entropy loss) and decode_greedy (host-side
    # string assembly) are Python/driver-level logic and are not part of the kernel.

    print("KERNEL_OK")
</pallas_src>

<mosaic_0001>
module attributes {stable_mosaic.version = 11 : i64} {
  func.func @_char_decoder_kernel(%arg0: i32, %arg1: memref<32x1xi32, #tpu.memory_space<vmem>>, %arg2: memref<128x128xf32, #tpu.memory_space<vmem>>, %arg3: memref<32x128xf32, #tpu.memory_space<vmem>>, %arg4: memref<32x128xf32, #tpu.memory_space<vmem>>, %arg5: memref<1x128xf32, #tpu.memory_space<vmem>>, %arg6: memref<4x32xf32, #tpu.memory_space<vmem>>, %arg7: memref<4x32xf32, #tpu.memory_space<vmem>>, %arg8: memref<32x128xf32, #tpu.memory_space<vmem>>, %arg9: memref<4x32xf32, #tpu.memory_space<vmem>>, %arg10: memref<4x32xf32, #tpu.memory_space<vmem>>) attributes {dimension_semantics = [#tpu.dimension_semantics<arbitrary>], iteration_bounds = array<i64: 1>, scalar_prefetch = 0 : i64, scratch_operands = 0 : i64, tpu.core_type = #tpu.core_type<tc>, window_params = [{pipeline_mode = #tpu.pipeline_mode<synchronous>, transform_indices = @transform_0, window_bounds = array<i64: 32, 1>}, {pipeline_mode = #tpu.pipeline_mode<synchronous>, transform_indices = @transform_1, window_bounds = array<i64: 128, 128>}, {pipeline_mode = #tpu.pipeline_mode<synchronous>, transform_indices = @transform_2, window_bounds = array<i64: 32, 128>}, {pipeline_mode = #tpu.pipeline_mode<synchronous>, transform_indices = @transform_3, window_bounds = array<i64: 32, 128>}, {pipeline_mode = #tpu.pipeline_mode<synchronous>, transform_indices = @transform_4, window_bounds = array<i64: 1, 128>}, {pipeline_mode = #tpu.pipeline_mode<synchronous>, transform_indices = @transform_5, window_bounds = array<i64: 4, 32>}, {pipeline_mode = #tpu.pipeline_mode<synchronous>, transform_indices = @transform_6, window_bounds = array<i64: 4, 32>}, {pipeline_mode = #tpu.pipeline_mode<synchronous>, transform_indices = @transform_7, window_bounds = array<i64: 32, 128>}, {pipeline_mode = #tpu.pipeline_mode<synchronous>, transform_indices = @transform_8, window_bounds = array<i64: 4, 32>}, {pipeline_mode = #tpu.pipeline_mode<synchronous>, transform_indices = @transform_9, window_bounds = array<i64: 4, 32>}]} {
    %c0 = arith.constant 0 : index
    %c0_0 = arith.constant 0 : index
    %0 = vector.load %arg1[%c0, %c0_0] : memref<32x1xi32, #tpu.memory_space<vmem>>, vector<32x1xi32>
    %1 = tpu.iota {dimensions = array<i32: 1>} : vector<32x128xi32>
    %2 = vector.broadcast %0 : vector<32x1xi32> to vector<32x128xi32>
    %3 = arith.cmpi eq, %1, %2 : vector<32x128xi32>
    %4 = arith.extui %3 : vector<32x128xi1> to vector<32x128xi32>
    %5 = arith.sitofp %4 : vector<32x128xi32> to vector<32x128xf32>
    %c0_1 = arith.constant 0 : index
    %c0_2 = arith.constant 0 : index
    %6 = vector.load %arg2[%c0_1, %c0_2] : memref<128x128xf32, #tpu.memory_space<vmem>>, vector<128x128xf32>
    %cst = arith.constant dense<0.000000e+00> : vector<32x128xf32>
    %7 = tpu.matmul %5, %6, %cst {dimension_numbers = #tpu.dot_dimension_numbers<[1], [0], [0], [1], [0, 0, 1, 1], [], []>, precision = #tpu.contract_precision<fp32>} : vector<32x128xf32>, vector<128x128xf32>, vector<32x128xf32> -> vector<32x128xf32>
    %c0_3 = arith.constant 0 : index
    %c0_4 = arith.constant 0 : index
    %8 = vector.load %arg3[%c0_3, %c0_4] : memref<32x128xf32, #tpu.memory_space<vmem>>, vector<32x128xf32>
    %9 = tpu.iota {dimensions = array<i32: 1>} : vector<4x128xi32>
    %c64_i32 = arith.constant 64 : i32
    %10 = vector.broadcast %c64_i32 : i32 to vector<4x128xi32>
    %11 = arith.cmpi sge, %9, %10 : vector<4x128xi32>
    %c96_i32 = arith.constant 96 : i32
    %12 = vector.broadcast %c96_i32 : i32 to vector<4x128xi32>
    %13 = arith.cmpi slt, %9, %12 : vector<4x128xi32>
    %14 = arith.andi %11, %13 : vector<4x128xi1>
    %c0_5 = arith.constant 0 : index
    %c0_6 = arith.constant 0 : index
    %15 = vector.load %arg6[%c0_5, %c0_6] : memref<4x32xf32, #tpu.memory_space<vmem>>, vector<4x32xf32>
    %c0_7 = arith.constant 0 : index
    %c0_8 = arith.constant 0 : index
    %16 = vector.load %arg7[%c0_7, %c0_8] : memref<4x32xf32, #tpu.memory_space<vmem>>, vector<4x32xf32>
    %17 = vector.extract_strided_slice %7 {offsets = [0, 0], sizes = [4, 128], strides = [1, 1]} : vector<32x128xf32> to vector<4x128xf32>
    %cst_9 = arith.constant dense<0.000000e+00> : vector<4x128xf32>
    %18 = tpu.matmul %15, %8, %cst_9 {dimension_numbers = #tpu.dot_dimension_numbers<[1], [0], [0], [1], [0, 0, 1, 1], [], []>, precision = #tpu.contract_precision<fp32>} : vector<4x32xf32>, vector<32x128xf32>, vector<4x128xf32> -> vector<4x128xf32>
    %19 = arith.addf %17, %18 : vector<4x128xf32>
    %20 = arith.negf %19 : vector<4x128xf32>
    %21 = math.exp %20 : vector<4x128xf32>
    %cst_10 = arith.constant 1.000000e+00 : f32
    %22 = vector.broadcast %cst_10 : f32 to vector<4x128xf32>
    %23 = arith.addf %22, %21 : vector<4x128xf32>
    %24 = arith.divf %22, %23 : vector<4x128xf32>
    %25 = math.tanh %19 : vector<4x128xf32>
    %26 = arith.select %14, %25, %24 : vector<4x128xi1>, vector<4x128xf32>
    %27 = vector.extract_strided_slice %26 {offsets = [0, 0], sizes = [4, 32], strides = [1, 1]} : vector<4x128xf32> to vector<4x32xf32>
    %28 = vector.extract_strided_slice %26 {offsets = [0, 32], sizes = [4, 32], strides = [1, 1]} : vector<4x128xf32> to vector<4x32xf32>
    %29 = vector.extract_strided_slice %26 {offsets = [0, 64], sizes = [4, 32], strides = [1, 1]} : vector<4x128xf32> to vector<4x32xf32>
    %30 = vector.extract_strided_slice %26 {offsets = [0, 96], sizes = [4, 32], strides = [1, 1]} : vector<4x128xf32> to vector<4x32xf32>
    %31 = arith.mulf %28, %16 : vector<4x32xf32>
    %32 = arith.mulf %27, %29 : vector<4x32xf32>
    %33 = arith.addf %31, %32 : vector<4x32xf32>
    %34 = math.tanh %33 : vector<4x32xf32>
    %35 = arith.mulf %30, %34 : vector<4x32xf32>
    %36 = vector.extract_strided_slice %7 {offsets = [4, 0], sizes = [4, 128], strides = [1, 1]} : vector<32x128xf32> to vector<4x128xf32>
    %cst_11 = arith.constant dense<0.000000e+00> : vector<4x128xf32>
    %37 = tpu.matmul %35, %8, %cst_11 {dimension_numbers = #tpu.dot_dimension_numbers<[1], [0], [0], [1], [0, 0, 1, 1], [], []>, precision = #tpu.contract_precision<fp32>} : vector<4x32xf32>, vector<32x128xf32>, vector<4x128xf32> -> vector<4x128xf32>
    %38 = arith.addf %36, %37 : vector<4x128xf32>
    %39 = arith.negf %38 : vector<4x128xf32>
    %40 = math.exp %39 : vector<4x128xf32>
    %cst_12 = arith.constant 1.000000e+00 : f32
    %41 = vector.broadcast %cst_12 : f32 to vector<4x128xf32>
    %42 = arith.addf %41, %40 : vector<4x128xf32>
    %43 = arith.divf %41, %42 : vector<4x128xf32>
    %44 = math.tanh %38 : vector<4x128xf32>
    %45 = arith.select %14, %44, %43 : vector<4x128xi1>, vector<4x128xf32>
    %46 = vector.extract_strided_slice %45 {offsets = [0, 0], sizes = [4, 32], strides = [1, 1]} : vector<4x128xf32> to vector<4x32xf32>
    %47 = vector.extract_strided_slice %45 {offsets = [0, 32], sizes = [4, 32], strides = [1, 1]} : vector<4x128xf32> to vector<4x32xf32>
    %48 = vector.extract_strided_slice %45 {offsets = [0, 64], sizes = [4, 32], strides = [1, 1]} : vector<4x128xf32> to vector<4x32xf32>
    %49 = vector.extract_strided_slice %45 {offsets = [0, 96], sizes = [4, 32], strides = [1, 1]} : vector<4x128xf32> to vector<4x32xf32>
    %50 = arith.mulf %47, %33 : vector<4x32xf32>
    %51 = arith.mulf %46, %48 : vector<4x32xf32>
    %52 = arith.addf %50, %51 : vector<4x32xf32>
    %53 = math.tanh %52 : vector<4x32xf32>
    %54 = arith.mulf %49, %53 : vector<4x32xf32>
    %55 = vector.extract_strided_slice %7 {offsets = [8, 0], sizes = [4, 128], strides = [1, 1]} : vector<32x128xf32> to vector<4x128xf32>
    %cst_13 = arith.constant dense<0.000000e+00> : vector<4x128xf32>
    %56 = tpu.matmul %54, %8, %cst_13 {dimension_numbers = #tpu.dot_dimension_numbers<[1], [0], [0], [1], [0, 0, 1, 1], [], []>, precision = #tpu.contract_precision<fp32>} : vector<4x32xf32>, vector<32x128xf32>, vector<4x128xf32> -> vector<4x128xf32>
    %57 = arith.addf %55, %56 : vector<4x128xf32>
    %58 = arith.negf %57 : vector<4x128xf32>
    %59 = math.exp %58 : vector<4x128xf32>
    %cst_14 = arith.constant 1.000000e+00 : f32
    %60 = vector.broadcast %cst_14 : f32 to vector<4x128xf32>
    %61 = arith.addf %60, %59 : vector<4x128xf32>
    %62 = arith.divf %60, %61 : vector<4x128xf32>
    %63 = math.tanh %57 : vector<4x128xf32>
    %64 = arith.select %14, %63, %62 : vector<4x128xi1>, vector<4x128xf32>
    %65 = vector.extract_strided_slice %64 {offsets = [0, 0], sizes = [4, 32], strides = [1, 1]} : vector<4x128xf32> to vector<4x32xf32>
    %66 = vector.extract_strided_slice %64 {offsets = [0, 32], sizes = [4, 32], strides = [1, 1]} : vector<4x128xf32> to vector<4x32xf32>
    %67 = vector.extract_strided_slice %64 {offsets = [0, 64], sizes = [4, 32], strides = [1, 1]} : vector<4x128xf32> to vector<4x32xf32>
    %68 = vector.extract_strided_slice %64 {offsets = [0, 96], sizes = [4, 32], strides = [1, 1]} : vector<4x128xf32> to vector<4x32xf32>
    %69 = arith.mulf %66, %52 : vector<4x32xf32>
    %70 = arith.mulf %65, %67 : vector<4x32xf32>
    %71 = arith.addf %69, %70 : vector<4x32xf32>
    %72 = math.tanh %71 : vector<4x32xf32>
    %73 = arith.mulf %68, %72 : vector<4x32xf32>
    %74 = vector.extract_strided_slice %7 {offsets = [12, 0], sizes = [4, 128], strides = [1, 1]} : vector<32x128xf32> to vector<4x128xf32>
    %cst_15 = arith.constant dense<0.000000e+00> : vector<4x128xf32>
    %75 = tpu.matmul %73, %8, %cst_15 {dimension_numbers = #tpu.dot_dimension_numbers<[1], [0], [0], [1], [0, 0, 1, 1], [], []>, precision = #tpu.contract_precision<fp32>} : vector<4x32xf32>, vector<32x128xf32>, vector<4x128xf32> -> vector<4x128xf32>
    %76 = arith.addf %74, %75 : vector<4x128xf32>
    %77 = arith.negf %76 : vector<4x128xf32>
    %78 = math.exp %77 : vector<4x128xf32>
    %cst_16 = arith.constant 1.000000e+00 : f32
    %79 = vector.broadcast %cst_16 : f32 to vector<4x128xf32>
    %80 = arith.addf %79, %78 : vector<4x128xf32>
    %81 = arith.divf %79, %80 : vector<4x128xf32>
    %82 = math.tanh %76 : vector<4x128xf32>
    %83 = arith.select %14, %82, %81 : vector<4x128xi1>, vector<4x128xf32>
    %84 = vector.extract_strided_slice %83 {offsets = [0, 0], sizes = [4, 32], strides = [1, 1]} : vector<4x128xf32> to vector<4x32xf32>
    %85 = vector.extract_strided_slice %83 {offsets = [0, 32], sizes = [4, 32], strides = [1, 1]} : vector<4x128xf32> to vector<4x32xf32>
    %86 = vector.extract_strided_slice %83 {offsets = [0, 64], sizes = [4, 32], strides = [1, 1]} : vector<4x128xf32> to vector<4x32xf32>
    %87 = vector.extract_strided_slice %83 {offsets = [0, 96], sizes = [4, 32], strides = [1, 1]} : vector<4x128xf32> to vector<4x32xf32>
    %88 = arith.mulf %85, %71 : vector<4x32xf32>
    %89 = arith.mulf %84, %86 : vector<4x32xf32>
    %90 = arith.addf %88, %89 : vector<4x32xf32>
    %91 = math.tanh %90 : vector<4x32xf32>
    %92 = arith.mulf %87, %91 : vector<4x32xf32>
    %93 = vector.extract_strided_slice %7 {offsets = [16, 0], sizes = [4, 128], strides = [1, 1]} : vector<32x128xf32> to vector<4x128xf32>
    %cst_17 = arith.constant dense<0.000000e+00> : vector<4x128xf32>
    %94 = tpu.matmul %92, %8, %cst_17 {dimension_numbers = #tpu.dot_dimension_numbers<[1], [0], [0], [1], [0, 0, 1, 1], [], []>, precision = #tpu.contract_precision<fp32>} : vector<4x32xf32>, vector<32x128xf32>, vector<4x128xf32> -> vector<4x128xf32>
    %95 = arith.addf %93, %94 : vector<4x128xf32>
    %96 = arith.negf %95 : vector<4x128xf32>
    %97 = math.exp %96 : vector<4x128xf32>
    %cst_18 = arith.constant 1.000000e+00 : f32
    %98 = vector.broadcast %cst_18 : f32 to vector<4x128xf32>
    %99 = arith.addf %98, %97 : vector<4x128xf32>
    %100 = arith.divf %98, %99 : vector<4x128xf32>
    %101 = math.tanh %95 : vector<4x128xf32>
    %102 = arith.select %14, %101, %100 : vector<4x128xi1>, vector<4x128xf32>
    %103 = vector.extract_strided_slice %102 {offsets = [0, 0], sizes = [4, 32], strides = [1, 1]} : vector<4x128xf32> to vector<4x32xf32>
    %104 = vector.extract_strided_slice %102 {offsets = [0, 32], sizes = [4, 32], strides = [1, 1]} : vector<4x128xf32> to vector<4x32xf32>
    %105 = vector.extract_strided_slice %102 {offsets = [0, 64], sizes = [4, 32], strides = [1, 1]} : vector<4x128xf32> to vector<4x32xf32>
    %106 = vector.extract_strided_slice %102 {offsets = [0, 96], sizes = [4, 32], strides = [1, 1]} : vector<4x128xf32> to vector<4x32xf32>
    %107 = arith.mulf %104, %90 : vector<4x32xf32>
    %108 = arith.mulf %103, %105 : vector<4x32xf32>
    %109 = arith.addf %107, %108 : vector<4x32xf32>
    %110 = math.tanh %109 : vector<4x32xf32>
    %111 = arith.mulf %106, %110 : vector<4x32xf32>
    %112 = vector.extract_strided_slice %7 {offsets = [20, 0], sizes = [4, 128], strides = [1, 1]} : vector<32x128xf32> to vector<4x128xf32>
    %cst_19 = arith.constant dense<0.000000e+00> : vector<4x128xf32>
    %113 = tpu.matmul %111, %8, %cst_19 {dimension_numbers = #tpu.dot_dimension_numbers<[1], [0], [0], [1], [0, 0, 1, 1], [], []>, precision = #tpu.contract_precision<fp32>} : vector<4x32xf32>, vector<32x128xf32>, vector<4x128xf32> -> vector<4x128xf32>
    %114 = arith.addf %112, %113 : vector<4x128xf32>
    %115 = arith.negf %114 : vector<4x128xf32>
    %116 = math.exp %115 : vector<4x128xf32>
    %cst_20 = arith.constant 1.000000e+00 : f32
    %117 = vector.broadcast %cst_20 : f32 to vector<4x128xf32>
    %118 = arith.addf %117, %116 : vector<4x128xf32>
    %119 = arith.divf %117, %118 : vector<4x128xf32>
    %120 = math.tanh %114 : vector<4x128xf32>
    %121 = arith.select %14, %120, %119 : vector<4x128xi1>, vector<4x128xf32>
    %122 = vector.extract_strided_slice %121 {offsets = [0, 0], sizes = [4, 32], strides = [1, 1]} : vector<4x128xf32> to vector<4x32xf32>
    %123 = vector.extract_strided_slice %121 {offsets = [0, 32], sizes = [4, 32], strides = [1, 1]} : vector<4x128xf32> to vector<4x32xf32>
    %124 = vector.extract_strided_slice %121 {offsets = [0, 64], sizes = [4, 32], strides = [1, 1]} : vector<4x128xf32> to vector<4x32xf32>
    %125 = vector.extract_strided_slice %121 {offsets = [0, 96], sizes = [4, 32], strides = [1, 1]} : vector<4x128xf32> to vector<4x32xf32>
    %126 = arith.mulf %123, %109 : vector<4x32xf32>
    %127 = arith.mulf %122, %124 : vector<4x32xf32>
    %128 = arith.addf %126, %127 : vector<4x32xf32>
    %129 = math.tanh %128 : vector<4x32xf32>
    %130 = arith.mulf %125, %129 : vector<4x32xf32>
    %131 = vector.extract_strided_slice %7 {offsets = [24, 0], sizes = [4, 128], strides = [1, 1]} : vector<32x128xf32> to vector<4x128xf32>
    %cst_21 = arith.constant dense<0.000000e+00> : vector<4x128xf32>
    %132 = tpu.matmul %130, %8, %cst_21 {dimension_numbers = #tpu.dot_dimension_numbers<[1], [0], [0], [1], [0, 0, 1, 1], [], []>, precision = #tpu.contract_precision<fp32>} : vector<4x32xf32>, vector<32x128xf32>, vector<4x128xf32> -> vector<4x128xf32>
    %133 = arith.addf %131, %132 : vector<4x128xf32>
    %134 = arith.negf %133 : vector<4x128xf32>
    %135 = math.exp %134 : vector<4x128xf32>
    %cst_22 = arith.constant 1.000000e+00 : f32
    %136 = vector.broadcast %cst_22 : f32 to vector<4x128xf32>
    %137 = arith.addf %136, %135 : vector<4x128xf32>
    %138 = arith.divf %136, %137 : vector<4x128xf32>
    %139 = math.tanh %133 : vector<4x128xf32>
    %140 = arith.select %14, %139, %138 : vector<4x128xi1>, vector<4x128xf32>
    %141 = vector.extract_strided_slice %140 {offsets = [0, 0], sizes = [4, 32], strides = [1, 1]} : vector<4x128xf32> to vector<4x32xf32>
    %142 = vector.extract_strided_slice %140 {offsets = [0, 32], sizes = [4, 32], strides = [1, 1]} : vector<4x128xf32> to vector<4x32xf32>
    %143 = vector.extract_strided_slice %140 {offsets = [0, 64], sizes = [4, 32], strides = [1, 1]} : vector<4x128xf32> to vector<4x32xf32>
    %144 = vector.extract_strided_slice %140 {offsets = [0, 96], sizes = [4, 32], strides = [1, 1]} : vector<4x128xf32> to vector<4x32xf32>
    %145 = arith.mulf %142, %128 : vector<4x32xf32>
    %146 = arith.mulf %141, %143 : vector<4x32xf32>
    %147 = arith.addf %145, %146 : vector<4x32xf32>
    %148 = math.tanh %147 : vector<4x32xf32>
    %149 = arith.mulf %144, %148 : vector<4x32xf32>
    %150 = vector.extract_strided_slice %7 {offsets = [28, 0], sizes = [4, 128], strides = [1, 1]} : vector<32x128xf32> to vector<4x128xf32>
    %cst_23 = arith.constant dense<0.000000e+00> : vector<4x128xf32>
    %151 = tpu.matmul %149, %8, %cst_23 {dimension_numbers = #tpu.dot_dimension_numbers<[1], [0], [0], [1], [0, 0, 1, 1], [], []>, precision = #tpu.contract_precision<fp32>} : vector<4x32xf32>, vector<32x128xf32>, vector<4x128xf32> -> vector<4x128xf32>
    %152 = arith.addf %150, %151 : vector<4x128xf32>
    %153 = arith.negf %152 : vector<4x128xf32>
    %154 = math.exp %153 : vector<4x128xf32>
    %cst_24 = arith.constant 1.000000e+00 : f32
    %155 = vector.broadcast %cst_24 : f32 to vector<4x128xf32>
    %156 = arith.addf %155, %154 : vector<4x128xf32>
    %157 = arith.divf %155, %156 : vector<4x128xf32>
    %158 = math.tanh %152 : vector<4x128xf32>
    %159 = arith.select %14, %158, %157 : vector<4x128xi1>, vector<4x128xf32>
    %160 = vector.extract_strided_slice %159 {offsets = [0, 0], sizes = [4, 32], strides = [1, 1]} : vector<4x128xf32> to vector<4x32xf32>
    %161 = vector.extract_strided_slice %159 {offsets = [0, 32], sizes = [4, 32], strides = [1, 1]} : vector<4x128xf32> to vector<4x32xf32>
    %162 = vector.extract_strided_slice %159 {offsets = [0, 64], sizes = [4, 32], strides = [1, 1]} : vector<4x128xf32> to vector<4x32xf32>
    %163 = vector.extract_strided_slice %159 {offsets = [0, 96], sizes = [4, 32], strides = [1, 1]} : vector<4x128xf32> to vector<4x32xf32>
    %164 = arith.mulf %161, %147 : vector<4x32xf32>
    %165 = arith.mulf %160, %162 : vector<4x32xf32>
    %166 = arith.addf %164, %165 : vector<4x32xf32>
    %167 = math.tanh %166 : vector<4x32xf32>
    %168 = arith.mulf %163, %167 : vector<4x32xf32>
    %c0_25 = arith.constant 0 : index
    %c0_26 = arith.constant 0 : index
    %169 = vector.load %arg9[%c0_25, %c0_26] : memref<4x32xf32, #tpu.memory_space<vmem>>, vector<4x32xf32>
    tpu.vector_store %arg9[%c0_25, %c0_26], %168 {strides = array<i32>} : memref<4x32xf32, #tpu.memory_space<vmem>>, vector<4x32xf32>,
    %c0_27 = arith.constant 0 : index
    %c0_28 = arith.constant 0 : index
    %170 = vector.load %arg10[%c0_27, %c0_28] : memref<4x32xf32, #tpu.memory_space<vmem>>, vector<4x32xf32>
    tpu.vector_store %arg10[%c0_27, %c0_28], %166 {strides = array<i32>} : memref<4x32xf32, #tpu.memory_space<vmem>>, vector<4x32xf32>,
    %171 = tpu.concatenate %35, %54, %73, %92, %111, %130, %149, %168 in 0 : vector<4x32xf32>, vector<4x32xf32>, vector<4x32xf32>, vector<4x32xf32>, vector<4x32xf32>, vector<4x32xf32>, vector<4x32xf32>, vector<4x32xf32> -> vector<32x32xf32>
    %c0_29 = arith.constant 0 : index
    %c0_30 = arith.constant 0 : index
    %172 = vector.load %arg4[%c0_29, %c0_30] : memref<32x128xf32, #tpu.memory_space<vmem>>, vector<32x128xf32>
    %cst_31 = arith.constant dense<0.000000e+00> : vector<32x128xf32>
    %173 = tpu.matmul %171, %172, %cst_31 {dimension_numbers = #tpu.dot_dimension_numbers<[1], [0], [0], [1], [0, 0, 1, 1], [], []>, precision = #tpu.contract_precision<fp32>} : vector<32x32xf32>, vector<32x128xf32>, vector<32x128xf32> -> vector<32x128xf32>
    %c0_32 = arith.constant 0 : index
    %c0_33 = arith.constant 0 : index
    %174 = vector.load %arg5[%c0_32, %c0_33] : memref<1x128xf32, #tpu.memory_space<vmem>>, vector<1x128xf32>
    %175 = vector.broadcast %174 : vector<1x128xf32> to vector<32x128xf32>
    %176 = arith.addf %173, %175 : vector<32x128xf32>
    %c0_34 = arith.constant 0 : index
    %c0_35 = arith.constant 0 : index
    %177 = vector.load %arg8[%c0_34, %c0_35] : memref<32x128xf32, #tpu.memory_space<vmem>>, vector<32x128xf32>
    tpu.vector_store %arg8[%c0_34, %c0_35], %176 {strides = array<i32>} : memref<32x128xf32, #tpu.memory_space<vmem>>, vector<32x128xf32>,
    return
  }
  func.func @transform_0(%arg0: i32) -> (i32, i32) {
    %c0_i32 = arith.constant 0 : i32
    %c0_i32_0 = arith.constant 0 : i32
    %c0_i32_1 = arith.constant 0 : i32
    return %c0_i32, %c0_i32_0 : i32, i32
  }
  func.func @transform_1(%arg0: i32) -> (i32, i32) {
    %c0_i32 = arith.constant 0 : i32
    %c0_i32_0 = arith.constant 0 : i32
    %c0_i32_1 = arith.constant 0 : i32
    return %c0_i32, %c0_i32_0 : i32, i32
  }
  func.func @transform_2(%arg0: i32) -> (i32, i32) {
    %c0_i32 = arith.constant 0 : i32
    %c0_i32_0 = arith.constant 0 : i32
    %c0_i32_1 = arith.constant 0 : i32
    return %c0_i32, %c0_i32_0 : i32, i32
  }
  func.func @transform_3(%arg0: i32) -> (i32, i32) {
    %c0_i32 = arith.constant 0 : i32
    %c0_i32_0 = arith.constant 0 : i32
    %c0_i32_1 = arith.constant 0 : i32
    return %c0_i32, %c0_i32_0 : i32, i32
  }
  func.func @transform_4(%arg0: i32) -> (i32, i32) {
    %c0_i32 = arith.constant 0 : i32
    %c0_i32_0 = arith.constant 0 : i32
    %c0_i32_1 = arith.constant 0 : i32
    return %c0_i32, %c0_i32_0 : i32, i32
  }
  func.func @transform_5(%arg0: i32) -> (i32, i32) {
    %c0_i32 = arith.constant 0 : i32
    %c0_i32_0 = arith.constant 0 : i32
    %c0_i32_1 = arith.constant 0 : i32
    return %c0_i32, %c0_i32_0 : i32, i32
  }
  func.func @transform_6(%arg0: i32) -> (i32, i32) {
    %c0_i32 = arith.constant 0 : i32
    %c0_i32_0 = arith.constant 0 : i32
    %c0_i32_1 = arith.constant 0 : i32
    return %c0_i32, %c0_i32_0 : i32, i32
  }
  func.func @transform_7(%arg0: i32) -> (i32, i32) {
    %c0_i32 = arith.constant 0 : i32
    %c0_i32_0 = arith.constant 0 : i32
    %c0_i32_1 = arith.constant 0 : i32
    return %c0_i32, %c0_i32_0 : i32, i32
  }
  func.func @transform_8(%arg0: i32) -> (i32, i32) {
    %c0_i32 = arith.constant 0 : i32
    %c0_i32_0 = arith.constant 0 : i32
    %c0_i32_1 = arith.constant 0 : i32
    return %c0_i32, %c0_i32_0 : i32, i32
  }
  func.func @transform_9(%arg0: i32) -> (i32, i32) {
    %c0_i32 = arith.constant 0 : i32
    %c0_i32_0 = arith.constant 0 : i32
    %c0_i32_1 = arith.constant 0 : i32
    return %c0_i32, %c0_i32_0 : i32, i32
  }
}

</mosaic_0001>

<bundles_post_ra>
// kernel: char_decoder_forward.1
= control target key start
LH: loop header
LB: loop body
LE: loop exit
PB: predicated region body
PF: predicated region fallthrough
CT: control target
= control target key end

     0   :  { %15 = vsyncpa [#allocation3], 0  ;;  %s8572_s0 = inlined_call_operand.vmem [shape: s32[32,1], index: 0, kind: input, shape index: {}]   ;;  %s8573_s1 = inlined_call_operand.hbm [shape: f32[128,128], index: 1, kind: input, shape index: {}]   ;;  %s8574_s2 = inlined_call_operand.vmem [shape: f32[32,128], index: 2, kind: input, shape index: {}]   ;;  %s8575_s3 = inlined_call_operand.hbm [shape: f32[32,128], index: 3, kind: input, shape index: {}]   ;;  %s8576_s4 = inlined_call_operand.vmem [shape: f32[1,128], index: 4, kind: input, shape index: {}]   ;;  %s8577_s5 = inlined_call_operand.vmem [shape: f32[4,32], index: 5, kind: input, shape index: {}]   ;;  %s8578_s6 = inlined_call_operand.vmem [shape: f32[4,32], index: 6, kind: input, shape index: {}]   ;;  %s8579_s7 = inlined_call_operand.hbm [shape: f32[32,128], index: 7, kind: output, shape index: {0}]   ;;  %s8580_s8 = inlined_call_operand.hbm [shape: f32[4,32], index: 8, kind: output, shape index: {1}]   ;;  %s8581_s9 = inlined_call_operand.hbm [shape: f32[4,32], index: 9, kind: output, shape index: {2}]  }
   0x1   :  { %16 = vsyncpa [#allocation6], 0 }
   0x2   :  { %17 = vsyncpa [#allocation4], 0 }
   0x3   :  { %18 = vsyncpa [#allocation9], 0  ;;  %s7222_s30 = smov [#allocation2]  }
   0x4   :  { %s26_s10 = sshll.u32 %s7222_s30, 4  ;;  %s27_s10 = int_to_ptr.vmem [resolvable:$true] %s26_s10 }
   0x5   :  { %s7122_s11 = scalar_lea.vmem %s27_s10, 2048  ;;  %p7127_p1 = scmp.lt.s32.totalorder %s27_s10, %s27_s10 }
   0x6   :  { %p7123_p0 = scmp.ne.s32.totalorder %s27_s10, %s7122_s11  ;;  %p7128_p2 = scmp.lt.s32.totalorder %s7122_s11, %s7122_s11 }
   0x8   :  { %p7129_p3 = por %p7128_p2, %p7127_p1 }
   0xa   :  { %p7130_p4 = pnand %p7129_p3, %p7123_p0 }
   0xc   :  { %7133 = shalt.err (!%p7130_p4)
}
   0xd   :  { %s7223_s12 = smov 128   ;;  %s7224_s13 = smov 8  }
   0xe   :  { %32 = dma.hbm_to_vmem [thread:$0]  %s8573_s1, 2048, %s27_s10, [#allocation3], %s7223_s12, %s7223_s12, %s7224_s13  }
   0xf   :  { %s7225_s16 = smov [#allocation5]  }
  0x10   :  { %s40_s17 = sshll.u32 %s7225_s16, 4  ;;  %s41_s17 = int_to_ptr.vmem [resolvable:$true] %s40_s17 }
  0x11   :  { %s7142_s18 = scalar_lea.vmem %s41_s17, 512  ;;  %p7147_p6 = scmp.lt.s32.totalorder %s41_s17, %s41_s17 }
  0x12   :  { %p7143_p5 = scmp.ne.s32.totalorder %s41_s17, %s7142_s18  ;;  %p7148_p7 = scmp.lt.s32.totalorder %s7142_s18, %s7142_s18 }
  0x14   :  { %p7149_p8 = por %p7148_p7, %p7147_p6 }
  0x16   :  { %p7150_p9 = pnand %p7149_p8, %p7143_p5 }
  0x18   :  { %7153 = shalt.err (!%p7150_p9)
}
  0x19   :  { %46 = dma.hbm_to_vmem [thread:$0]  %s8575_s3, 512, %s41_s17, [#allocation6], %s7223_s12, %s7223_s12, %s7224_s13  }
  0x1a   :  { %7214 = dma.done.wait [#allocation3], 2048  }
  0x1b   :  { %7215 = vsyncadd [#allocation3], 4294965248 }
  0x1c   :  { %7216 = dma.done.wait [#allocation6], 512  }
  0x1d   :  { %7217 = vsyncadd [#allocation6], 4294966784  ;;  %v7226_v0 = vmov 0   ;;  %v59_v1 = vld [vmem:[%s8572_s0] sm:$0xff]  ;;  %v61_v2 = vld [vmem:[%s8572_s0 + $0x10] sm:$0xff]  ;;  %vm884_vm4 = vcmask 261120  }
  0x1e   :  { %7048 = vset.pattern.permute.xlu0 %v7226_v0  ;;  %7049 = vset.pattern.permute.xlu1 %v7226_v0  ;;  %v60_v3 = vld [vmem:[%s8572_s0 + $0x8] sm:$0xff]  ;;  %v62_v4 = vld [vmem:[%s8572_s0 + $0x18] sm:$0xff]  ;;  %v103_v6 = vld [vmem:[#allocation2 + $0x70] sm:$0xff]  ;;  %vm7229_vm5 = vmmov 0   ;;  %s7230_s17 = smov 32   ;;  %vm5062_vm9 = vcmask 1043456  }
  0x1f   :  { %66 = vperm.xlu0 %7048, %v59_v1   ;;  %72 = vperm.xlu1 %7049, %v61_v2   ;;  %v104_v5 = vld [vmem:[#allocation2 + $0x78] sm:$0xff]  ;;  %v7312_v8 = vand.u32 4294901760, %v103_v6  ;;  %v102_v9 = vld [vmem:[#allocation2 + $0x68] sm:$0xff]  ;;  %v101_v10 = vld [vmem:[#allocation2 + $0x60] sm:$0xff]  ;;  %s7232_s18 = smov 96   ;;  %vm5055_vm10 = vcmask 261124  }
  0x20   :  { %v7310_v7 = vand.u32 4294901760, %v104_v5  ;;  %v100_v11 = vld [vmem:[#allocation2 + $0x58] sm:$0xff]  ;;  %v7314_v12 = vand.u32 4294901760, %v102_v9  ;;  %v7316_v13 = vand.u32 4294901760, %v101_v10  ;;  %v99_v15 = vld [vmem:[#allocation2 + $0x50] sm:$0xff]  ;;  %v98_v16 = vld [vmem:[#allocation2 + $0x48] sm:$0xff] }
  0x21   :  { %v7318_v14 = vand.u32 4294901760, %v100_v11  ;;  %v97_v17 = vld [vmem:[#allocation2 + $0x40] sm:$0xff]  ;;  %v7324_v19 = vsub.f32 %v103_v6, %v7312_v8  ;;  %v7327_v20 = vand.u32 4294901760, %v99_v15  ;;  %v7329_v21 = vand.u32 4294901760, %v98_v16  ;;  %v96_v38 = vld [vmem:[#allocation2 + $0x38] sm:$0xff]  ;;  %v95_v39 = vld [vmem:[#allocation2 + $0x30] sm:$0xff] }
  0x22   :  { %v7321_v18 = vsub.f32 %v104_v5, %v7310_v7  ;;  %6194 = vmatprep.subr.mxu0 %v7310_v7  ;;  %v7332_v22 = vsub.f32 %v102_v9, %v7314_v12  ;;  %v7335_v23 = vsub.f32 %v101_v10, %v7316_v13  ;;  %v7340_v25 = vand.u32 4294901760, %v97_v17  ;;  %v94_v43 = vld [vmem:[#allocation2 + $0x28] sm:$0xff]  ;;  %v93_v45 = vld [vmem:[#allocation2 + $0x20] sm:$0xff]  ;;  %v92_v53 = vld [vmem:[#allocation2 + $0x18] sm:$0xff]  ;;  %s7233_s19 = smov [#allocation8]  }
  0x23   :  { %69 = vperm.xlu0 %7048, %v60_v3   ;;  %75 = vperm.xlu1 %7049, %v62_v4   ;;  %v7338_v24 = vsub.f32 %v100_v11, %v7318_v14  ;;  %v7346_v27 = vand.u32 4294901760, %v7324_v19  ;;  %v7350_v28 = vsub.f32 %v99_v15, %v7327_v20  ;;  %v7360_v31 = vsub.f32 %v98_v16, %v7329_v21  ;;  %v91_v59 = vld [vmem:[#allocation2 + $0x10] sm:$0xff]  ;;  %v90_v1 = vld [vmem:[#allocation2 + $0x8] sm:$0xff]  ;;  %v89_v9 = vld [vmem:[#allocation2] sm:$0xff]  ;;  %s5734_s20 = sshll.u32 %s7233_s19, 4  ;;  %s5735_s20 = int_to_ptr.vmem [resolvable:$true] %s5734_s20 }
  0x24   :  { %v7343_v26 = vand.u32 4294901760, %v7321_v18  ;;  %6195 = vmatpush3.msra.mxu0 %v7310_v7  ;;  %v7353_v29 = vand.u32 4294901760, %v7332_v22  ;;  %v7356_v30 = vand.u32 4294901760, %v7335_v23  ;;  %v7377_v37 = vsub.f32 %v97_v17, %v7340_v25  ;;  %s7154_s1 = scalar_lea.vmem %s5735_s20, 64  ;;  %p7159_p11 = scmp.lt.s32.totalorder %s5735_s20, %s5735_s20 }
  0x25   :  { %6196 = vmatprep.subr.mxu0 %v7312_v8  ;;  %v237_v33 = vsub.f32 %v7324_v19, %v7346_v27  ;;  %v7367_v34 = vand.u32 4294901760, %v7338_v24  ;;  %v7373_v36 = vand.u32 4294901760, %v7350_v28  ;;  %v7383_v44 = vand.u32 4294901760, %v7360_v31  ;;  %p7155_p10 = scmp.ne.s32.totalorder %s5735_s20, %s7154_s1  ;;  %p7160_p12 = scmp.lt.s32.totalorder %s7154_s1, %s7154_s1 }
  0x26   :  { %v230_v32 = vsub.f32 %v7321_v18, %v7343_v26  ;;  %6197 = vmatpush3.msra.mxu0 %v7312_v8  ;;  %v244_v35 = vsub.f32 %v7332_v22, %v7353_v29  ;;  %v251_v42 = vsub.f32 %v7335_v23, %v7356_v30  ;;  %v7389_v48 = vand.u32 4294901760, %v96_v38 }
  0x27   :  { %6198 = vmatprep.subr.mxu0 %v7314_v12  ;;  %v238_v41 = vand.u32 4294901760, %v237_v33  ;;  %v258_v47 = vsub.f32 %v7338_v24, %v7367_v34  ;;  %v7391_v49 = vand.u32 4294901760, %v95_v39  ;;  %v265_v50 = vsub.f32 %v7350_v28, %v7373_v36  ;;  %p7161_p13 = por %p7160_p12, %p7159_p11 }
  0x28   :  { %v231_v40 = vand.u32 4294901760, %v230_v32  ;;  %6199 = vmatpush3.msra.mxu0 %v7314_v12  ;;  %v245_v46 = vand.u32 4294901760, %v244_v35  ;;  %v7396_v51 = vand.u32 4294901760, %v7377_v37  ;;  %v7399_v52 = vand.u32 4294901760, %v94_v43 }
  0x29   :  { %6200 = vmatprep.subr.mxu0 %v7316_v13  ;;  %v252_v54 = vand.u32 4294901760, %v251_v42  ;;  %v7402_v55 = vsub.f32 %v96_v38, %v7389_v48  ;;  %v7406_v56 = vsub.f32 %v95_v39, %v7391_v49  ;;  %v7408_v57 = vand.u32 4294901760, %v93_v45  ;;  %p7162_p0 = pnand %p7161_p13, %p7155_p10 }
  0x2a   :  { %6232 = vmatprep.subr.mxu1 %v231_v40  ;;  %6201 = vmatpush3.msra.mxu0 %v7316_v13  ;;  %v272_v58 = vsub.f32 %v7360_v31, %v7383_v44  ;;  %v259_v60 = vand.u32 4294901760, %v258_v47  ;;  %v7418_v62 = vsub.f32 %v94_v43, %v7399_v52  ;;  %v7420_v63 = vand.u32 4294901760, %v92_v53 }
  0x2b   :  { %6233 = vmatpush3.msra.mxu1 %v231_v40  ;;  %6202 = vmatprep.subr.mxu0 %v7318_v14  ;;  %v7414_v61 = vand.u32 4294901760, %v7402_v55  ;;  %v279_v0 = vsub.f32 %v7377_v37, %v7396_v51  ;;  %v266_v2 = vand.u32 4294901760, %v265_v50  ;;  %v7426_v3 = vand.u32 4294901760, %v7406_v56 }
  0x2c   :  { %6234 = vmatprep.subr.mxu1 %v238_v41  ;;  %6203 = vmatpush3.msra.mxu0 %v7318_v14  ;;  %v7430_v4 = vsub.f32 %v93_v45, %v7408_v57  ;;  %v7432_v5 = vand.u32 4294901760, %v91_v59  ;;  %v273_v6 = vand.u32 4294901760, %v272_v58  ;;  %v7438_v11 = vand.u32 4294901760, %v7418_v62 }
  0x2d   :  { %6235 = vmatpush3.msra.mxu1 %v238_v41  ;;  %6204 = vmatprep.subr.mxu0 %v7327_v20  ;;  %v286_v10 = vsub.f32 %v7402_v55, %v7414_v61  ;;  %v7442_v15 = vsub.f32 %v92_v53, %v7420_v63  ;;  %v7444_v16 = vand.u32 4294901760, %v90_v1  ;;  %v280_v17 = vand.u32 4294901760, %v279_v0 }
  0x2e   :  { %6236 = vmatprep.subr.mxu1 %v245_v46  ;;  %6205 = vmatpush3.msra.mxu0 %v7327_v20  ;;  %v293_v32 = vsub.f32 %v7406_v56, %v7426_v3  ;;  %v7450_v33 = vand.u32 4294901760, %v7430_v4  ;;  %v7454_v35 = vsub.f32 %v91_v59, %v7432_v5  ;;  %v7456_v38 = vand.u32 4294901760, %v89_v9 }
  0x2f   :  { %6237 = vmatpush3.msra.mxu1 %v245_v46  ;;  %6206 = vmatprep.subr.mxu0 %v7329_v21  ;;  %v287_v39 = vand.u32 4294901760, %v286_v10  ;;  %v300_v40 = vsub.f32 %v7418_v62, %v7438_v11  ;;  %v7462_v41 = vand.u32 4294901760, %v7442_v15  ;;  %v7466_v42 = vsub.f32 %v90_v1, %v7444_v16 }
  0x30   :  { %6238 = vmatprep.subr.mxu1 %v252_v54  ;;  %6207 = vmatpush3.msra.mxu0 %v7329_v21  ;;  %v294_v43 = vand.u32 4294901760, %v293_v32  ;;  %v307_v45 = vsub.f32 %v7430_v4, %v7450_v33  ;;  %v7472_v46 = vand.u32 4294901760, %v7454_v35  ;;  %v7476_v47 = vsub.f32 %v89_v9, %v7456_v38 }
  0x31   :  { %6239 = vmatpush3.msra.mxu1 %v252_v54  ;;  %6208 = vmatprep.subr.mxu0 %v7340_v25  ;;  %v301_v50 = vand.u32 4294901760, %v300_v40  ;;  %v314_v53 = vsub.f32 %v7442_v15, %v7462_v41  ;;  %v7482_v54 = vand.u32 4294901760, %v7466_v42 }
  0x32   :  { %6240 = vmatprep.subr.mxu1 %v259_v60  ;;  %6209 = vmatpush3.msra.mxu0 %v7340_v25  ;;  %v308_v58 = vand.u32 4294901760, %v307_v45  ;;  %v321_v59 = vsub.f32 %v7454_v35, %v7472_v46 }
  0x33   :  { %6241 = vmatpush3.msra.mxu1 %v259_v60  ;;  %6210 = vmatprep.subr.mxu0 %v7389_v48  ;;  %8591 = vst [vmem:[#allocation15_spill] sm:$0xff] %v7482_v54  ;;  %v7489_v60 = vand.u32 4294901760, %v7476_v47  ;;  %v315_v0 = vand.u32 4294901760, %v314_v53  ;;  %v328_v1 = vsub.f32 %v7466_v42, %v7482_v54 }
  0x34   :  { %6242 = vmatprep.subr.mxu1 %v266_v2  ;;  %6211 = vmatpush3.msra.mxu0 %v7389_v48 }
  0x35   :  { %6243 = vmatpush3.msra.mxu1 %v266_v2  ;;  %6212 = vmatprep.subr.mxu0 %v7391_v49  ;;  %8592 = vst [vmem:[#allocation16_spill] sm:$0xff] %v7489_v60  ;;  %v322_v2 = vand.u32 4294901760, %v321_v59  ;;  %v329_v9 = vand.u32 4294901760, %v328_v1 }
  0x36   :  { %6244 = vmatprep.subr.mxu1 %v273_v6  ;;  %6213 = vmatpush3.msra.mxu0 %v7391_v49 }
  0x37   :  { %6245 = vmatpush3.msra.mxu1 %v273_v6  ;;  %6214 = vmatprep.subr.mxu0 %v7399_v52  ;;  %v335_v6 = vsub.f32 %v7476_v47, %v7489_v60 }
  0x38   :  { %6246 = vmatprep.subr.mxu1 %v280_v17  ;;  %6215 = vmatpush3.msra.mxu0 %v7399_v52 }
  0x39   :  { %6247 = vmatpush3.msra.mxu1 %v280_v17  ;;  %6216 = vmatprep.subr.mxu0 %v7408_v57  ;;  %v336_v10 = vand.u32 4294901760, %v335_v6  ;;  %v63_v17 = vlaneseq }
  0x3a   :  { %6248 = vmatprep.subr.mxu1 %v287_v39  ;;  %6217 = vmatpush3.msra.mxu0 %v7408_v57 }
  0x3b   :  { %6249 = vmatpush3.msra.mxu1 %v287_v39  ;;  %6218 = vmatprep.subr.mxu0 %v7420_v63  ;;  %v7504_v32 = vand.u32 127, %v63_v17 }
  0x3c   :  { %6250 = vmatprep.subr.mxu1 %v294_v43  ;;  %6219 = vmatpush3.msra.mxu0 %v7420_v63 }
  0x3d   :  { %6251 = vmatpush3.msra.mxu1 %v294_v43  ;;  %6220 = vmatprep.subr.mxu0 %v7432_v5  ;;  %v8584_v43 = vmov 0.0   ;;  %vm879_vm6 = vcmp.ge.s32.totalorder %v7504_v32, 64  ;;  %vm880_vm7 = vcmp.lt.s32.totalorder %v7504_v32, 96 }
  0x3e   :  { %6252 = vmatprep.subr.mxu1 %v301_v50  ;;  %6221 = vmatpush3.msra.mxu0 %v7432_v5  ;;  %vm7911_vm8 = vmand %vm879_vm6, %vm880_vm7 }
  0x3f   :  { %6253 = vmatpush3.msra.mxu1 %v301_v50  ;;  %6222 = vmatprep.subr.mxu0 %v7444_v16  ;;  %v8588_v50 = vmov 1.0  }
  0x40   :  { %6254 = vmatprep.subr.mxu1 %v308_v58  ;;  %6223 = vmatpush3.msra.mxu0 %v7444_v16 }
  0x41   :  { %6255 = vmatpush3.msra.mxu1 %v308_v58  ;;  %6224 = vmatprep.subr.mxu0 %v7456_v38 }
  0x42   :  { %6256 = vmatprep.subr.mxu1 %v315_v0  ;;  %6225 = vmatpush3.msra.mxu0 %v7456_v38 }
  0x43   :  { %6257 = vmatpush3.msra.mxu1 %v315_v0  ;;  %6270 = vmatprep.subr.mxu0 %v7321_v18 }
  0x44   :  { %6258 = vmatprep.subr.mxu1 %v322_v2 }
  0x45   :  { %6259 = vmatpush3.msra.mxu1 %v322_v2 }
  0x46   :  { %6260 = vmatprep.subr.mxu1 %v329_v9 }
  0x47   :  { %6261 = vmatpush3.msra.mxu1 %v329_v9 }
  0x48   :  { %6262 = vmatprep.subr.mxu1 %v336_v10 }
  0x49   :  { %6263 = vmatpush3.msra.mxu1 %v336_v10 }
  0x4a   :  { %6308 = vmatprep.subr.mxu1 %v7310_v7 }
  0x9a   :  { %v7506_v39 = vpop.permute.xlu0 %66  ;;  %v7508_v40 = vpop.permute.xlu1 %72 }
  0x9b   :  { %vm77_vm0 = vcmp.eq.s32.totalorder %v7504_v32, %v7506_v39  ;;  %vm79_vm1 = vcmp.eq.s32.totalorder %v7504_v32, %v7508_v40 }
  0x9c   :  { %v5761_v45 = vsel %vm77_vm0, 1.0, %v8584_v43  ;;  %6264 = vmatprep.mubr.msk.f32.mxu1 %vm77_vm0, %v8588_v50  ;;  %v5763_v53 = vsel %vm79_vm1, 1.0, %v8584_v43 }
  0x9d   :  { %v187_v58 = vsub.f32 %v5761_v45, %v5761_v45  ;;  %v7526_v59 = vsub.f32 %v5763_v53, %v5763_v53 }
  0x9e   :  { %v7528_v0 = vpop.permute.xlu0 %69  ;;  %v7530_v1 = vpop.permute.xlu1 %75 }
  0x9f   :  { %vm78_vm2 = vcmp.eq.s32.totalorder %v7504_v32, %v7528_v0  ;;  %vm80_vm3 = vcmp.eq.s32.totalorder %v7504_v32, %v7530_v1  ;;  %v188_v2 = vand.u32 4294901760, %v187_v58  ;;  %v8590_v53 = vand.u32 4294901760, %v7526_v59 }
  0xa0   :  { %v5762_v6 = vsel %vm78_vm2, 1.0, %v8584_v43  ;;  %6265 = vmatmul.mubr.msk.f32.vlgmr.msra.gmra.mxu1 %vm78_vm2, %v8588_v50  ;;  %v5764_v9 = vsel %vm80_vm3, 1.0, %v8584_v43 }
  0xa1   :  { %v7548_v10 = vsub.f32 %v5762_v6, %v5762_v6  ;;  %6309 = vmatpush3.msra.mxu1 %v7310_v7  ;;  %v7551_v17 = vsub.f32 %v5764_v9, %v5764_v9  ;;  %6267 = vmatprep.mubr.msk.f32.mxu1 %vm79_vm1, %v8588_v50  ;;  %v189_v45 = vsub.f32 %v187_v58, %v188_v2 }
  0xa2   :  { %6310 = vmatprep.subr.mxu1 %v7312_v8 }
  0xa3   :  { %6311 = vmatpush3.msra.mxu1 %v7312_v8  ;;  %v190_v60 = vand.u32 4294901760, %v189_v45  ;;  %v198_v6 = vand.u32 4294901760, %v7548_v10  ;;  %v218_v43 = vand.u32 4294901760, %v7551_v17  ;;  %v209_v45 = vsub.f32 %v7526_v59, %v8590_v53 }
  0xa4   :  { %6312 = vmatprep.subr.mxu1 %v7314_v12  ;;  %6268 = vmatmul.mubr.msk.f32.gmra.mxu1 %vm80_vm3, %v8588_v50 }
  0xa5   :  { %6313 = vmatpush3.msra.mxu1 %v7314_v12  ;;  %6226 = vmatprep.mubr.f32.mxu0 %v190_v60  ;;  %v199_v9 = vsub.f32 %v7548_v10, %v198_v6  ;;  %v219_v54 = vsub.f32 %v7551_v17, %v218_v43  ;;  %v210_v60 = vand.u32 4294901760, %v209_v45 }
  0xa6   :  { %6314 = vmatprep.subr.mxu1 %v7316_v13  ;;  %6340 = vmatprep.mubr.f32.mxu1 %v188_v2 }
  0xa7   :  { %6315 = vmatpush3.msra.mxu1 %v7316_v13  ;;  %v200_v50 = vand.u32 4294901760, %v199_v9  ;;  %v220_v53 = vand.u32 4294901760, %v219_v54 }
  0xa8   :  { %6316 = vmatprep.subr.mxu1 %v7318_v14 }
  0xa9   :  { %6317 = vmatpush3.msra.mxu1 %v7318_v14  ;;  %6227 = vmatmul.mubr.f32.vlgmr.msra.gmra.mxu0 %v200_v50 }
  0xaa   :  { %6271 = vmatpush3.msra.mxu0 %v7321_v18  ;;  %6318 = vmatprep.subr.mxu1 %v7327_v20  ;;  %v8593_v18 = vand.u32 4294901760, %v7526_v59 }
  0xab   :  { %6272 = vmatprep.subr.mxu0 %v7324_v19  ;;  %6319 = vmatpush3.msra.mxu1 %v7327_v20 }
  0xac   :  { %6273 = vmatpush3.msra.mxu0 %v7324_v19  ;;  %6320 = vmatprep.subr.mxu1 %v7329_v21 }
  0xad   :  { %6229 = vmatprep.mubr.f32.mxu0 %v210_v60  ;;  %6274 = vmatprep.subr.mxu0 %v7332_v22 }
  0xae   :  { %6321 = vmatpush3.msra.mxu1 %v7329_v21  ;;  %6230 = vmatmul.mubr.f32.gmra.mxu0 %v220_v53 }
  0xaf   :  { %6275 = vmatpush3.msra.mxu0 %v7332_v22  ;;  %6322 = vmatprep.subr.mxu1 %v7340_v25 }
  0xb0   :  { %6276 = vmatprep.subr.mxu0 %v7335_v23  ;;  %6302 = vmatprep.mubr.f32.mxu0 %v187_v58 }
  0xb1   :  { %6323 = vmatpush3.msra.mxu1 %v7340_v25  ;;  %6277 = vmatpush3.msra.mxu0 %v7335_v23  ;;  %v882_v23 = vld [vmem:[%s8577_s5] sm:$0xf] }
  0xb2   :  { %6324 = vmatprep.subr.mxu1 %v7389_v48  ;;  %6278 = vmatprep.subr.mxu0 %v7338_v24 }
  0xb3   :  { %6325 = vmatpush3.msra.mxu1 %v7389_v48  ;;  %6279 = vmatpush3.msra.mxu0 %v7338_v24 }
  0xb4   :  { %6326 = vmatprep.subr.mxu1 %v7391_v49  ;;  %6280 = vmatprep.subr.mxu0 %v7350_v28 }
  0xb5   :  { %6327 = vmatpush3.msra.mxu1 %v7391_v49  ;;  %6281 = vmatpush3.msra.mxu0 %v7350_v28 }
  0xb6   :  { %6328 = vmatprep.subr.mxu1 %v7399_v52  ;;  %6282 = vmatprep.subr.mxu0 %v7360_v31 }
  0xb7   :  { %6329 = vmatpush3.msra.mxu1 %v7399_v52  ;;  %6283 = vmatpush3.msra.mxu0 %v7360_v31 }
  0xb8   :  { %6330 = vmatprep.subr.mxu1 %v7408_v57  ;;  %6284 = vmatprep.subr.mxu0 %v7377_v37 }
  0xb9   :  { %6331 = vmatpush3.msra.mxu1 %v7408_v57  ;;  %6285 = vmatpush3.msra.mxu0 %v7377_v37 }
  0xba   :  { %6332 = vmatprep.subr.mxu1 %v7420_v63  ;;  %6286 = vmatprep.subr.mxu0 %v7402_v55 }
  0xbb   :  { %6333 = vmatpush3.msra.mxu1 %v7420_v63  ;;  %6287 = vmatpush3.msra.mxu0 %v7402_v55 }
  0xbc   :  { %6334 = vmatprep.subr.mxu1 %v7432_v5  ;;  %6288 = vmatprep.subr.mxu0 %v7406_v56 }
  0xbd   :  { %6335 = vmatpush3.msra.mxu1 %v7432_v5  ;;  %6289 = vmatpush3.msra.mxu0 %v7406_v56  ;;  %v8596_v56 = vld [vmem:[#allocation15_spill] sm:$0xff] }
  0xbe   :  { %6336 = vmatprep.subr.mxu1 %v7444_v16  ;;  %6290 = vmatprep.subr.mxu0 %v7418_v62 }
  0xbf   :  { %6337 = vmatpush3.msra.mxu1 %v7444_v16  ;;  %6291 = vmatpush3.msra.mxu0 %v7418_v62 }
  0xc0   :  { %6338 = vmatprep.subr.mxu1 %v7456_v38  ;;  %6292 = vmatprep.subr.mxu0 %v7430_v4 }
  0xc1   :  { %6339 = vmatpush3.msra.mxu1 %v7456_v38  ;;  %6293 = vmatpush3.msra.mxu0 %v7430_v4 }
  0xc2   :  { %6341 = vmatmul.mubr.f32.vlgmr.msra.gmra.mxu1 %v198_v6  ;;  %6384 = vmatprep.subr.mxu1 %v7310_v7 }
  0xc3   :  { %6294 = vmatprep.subr.mxu0 %v7442_v15  ;;  %6343 = vmatprep.mubr.f32.mxu1 %v8593_v18 }
  0xc4   :  { %6385 = vmatpush3.msra.mxu1 %v7310_v7  ;;  %6295 = vmatpush3.msra.mxu0 %v7442_v15  ;;  %v8594_v7 = vmov 1.0  }
  0xc5   :  { %6386 = vmatprep.subr.mxu1 %v7312_v8  ;;  %6296 = vmatprep.subr.mxu0 %v7454_v35 }
  0xc6   :  { %6387 = vmatpush3.msra.mxu1 %v7312_v8  ;;  %6297 = vmatpush3.msra.mxu0 %v7454_v35  ;;  %v878_v8 = vld [vmem:[%s8574_s2 + $0x18] sm:$0xff] }
  0xc7   :  { %6344 = vmatmul.mubr.f32.gmra.mxu1 %v218_v43  ;;  %6388 = vmatprep.subr.mxu1 %v7314_v12 }
  0xc8   :  { %6298 = vmatprep.subr.mxu0 %v7466_v42  ;;  %6389 = vmatpush3.msra.mxu1 %v7314_v12  ;;  %v7678_v12 = vand.u32 4294901760, %v878_v8 }
  0xc9   :  { %6416 = vmatprep.mubr.msk.f32.mxu1 %vm77_vm0, %v8594_v7  ;;  %6299 = vmatpush3.msra.mxu0 %v7466_v42 }
  0xca   :  { %6390 = vmatprep.subr.mxu1 %v7316_v13  ;;  %6300 = vmatprep.subr.mxu0 %v7476_v47  ;;  %v7694_v19 = vsub.f32 %v878_v8, %v7678_v12 }
  0xcb   :  { %6391 = vmatpush3.msra.mxu1 %v7316_v13  ;;  %6301 = vmatpush3.msra.mxu0 %v7476_v47  ;;  %v877_v13 = vld [vmem:[%s8574_s2 + $0x10] sm:$0xff] }
  0xcc   :  { %6392 = vmatprep.subr.mxu1 %v7318_v14  ;;  %6303 = vmatmul.mubr.f32.vlgmr.msra.gmra.mxu0 %v7548_v10  ;;  %v7716_v24 = vand.u32 4294901760, %v7694_v19 }
  0xcd   :  { %6346 = vmatprep.subr.mxu0 %v7343_v26  ;;  %6393 = vmatpush3.msra.mxu1 %v7318_v14  ;;  %v7689_v14 = vand.u32 4294901760, %v877_v13 }
  0xce   :  { %6305 = vmatprep.mubr.f32.mxu0 %v7526_v59  ;;  %6347 = vmatpush3.msra.mxu0 %v7343_v26  ;;  %v886_v26 = vsel %vm884_vm4, %v882_v23, 0 }
  0xcf   :  { %6394 = vmatprep.subr.mxu1 %v7327_v20  ;;  %6348 = vmatprep.subr.mxu0 %v7346_v27  ;;  %v7742_v31 = vand.u32 4294901760, %v886_v26 }
  0xd0   :  { %6395 = vmatpush3.msra.mxu1 %v7327_v20  ;;  %6349 = vmatpush3.msra.mxu0 %v7346_v27  ;;  %v876_v20 = vld [vmem:[%s8574_s2 + $0x8] sm:$0xff] }
  0xd1   :  { %6396 = vmatprep.subr.mxu1 %v7329_v21  ;;  %6306 = vmatmul.mubr.f32.gmra.mxu0 %v7551_v17  ;;  %v7708_v22 = vand.u32 4294901760, %v876_v20 }
  0xd2   :  { %6350 = vmatprep.subr.mxu0 %v7353_v29  ;;  %6397 = vmatpush3.msra.mxu1 %v7329_v21  ;;  %v7706_v21 = vsub.f32 %v877_v13, %v7689_v14 }
  0xd3   :  { %6351 = vmatpush3.msra.mxu0 %v7353_v29  ;;  %6378 = vmatprep.mubr.msk.f32.mxu0 %vm77_vm0, %v8594_v7  ;;  %v7732_v28 = vsub.f32 %v876_v20, %v7708_v22 }
  0xd4   :  { %6398 = vmatprep.subr.mxu1 %v7340_v25  ;;  %6352 = vmatprep.subr.mxu0 %v7356_v30  ;;  %v7729_v27 = vand.u32 4294901760, %v7706_v21 }
  0xd5   :  { %6399 = vmatpush3.msra.mxu1 %v7340_v25  ;;  %6353 = vmatpush3.msra.mxu0 %v7356_v30  ;;  %v875_v25 = vld [vmem:[%s8574_s2] sm:$0xff]  ;;  %v995_v30 = vsub.f32 %v7694_v19, %v7716_v24 }
  0xd6   :  { %6400 = vmatprep.subr.mxu1 %v7389_v48  ;;  %6354 = vmatprep.subr.mxu0 %v7367_v34  ;;  %v7734_v29 = vand.u32 4294901760, %v875_v25 }
  0xd7   :  { %6401 = vmatpush3.msra.mxu1 %v7389_v48  ;;  %6355 = vmatpush3.msra.mxu0 %v7367_v34  ;;  %v1002_v34 = vsub.f32 %v7706_v21, %v7729_v27  ;;  %v7766_v48 = vsub.f32 %v886_v26, %v7742_v31 }
  0xd8   :  { %6402 = vmatprep.subr.mxu1 %v7391_v49  ;;  %6356 = vmatprep.subr.mxu0 %v7373_v36  ;;  %v7754_v37 = vsub.f32 %v875_v25, %v7734_v29 }
  0xd9   :  { %6403 = vmatpush3.msra.mxu1 %v7391_v49  ;;  %6357 = vmatpush3.msra.mxu0 %v7373_v36  ;;  %v7751_v36 = vand.u32 4294901760, %v7732_v28  ;;  %v8595_v49 = vmov 0.0  }
  0xda   :  { %6404 = vmatprep.subr.mxu1 %v7399_v52  ;;  %6358 = vmatprep.subr.mxu0 %v7383_v44  ;;  %v7780_v55 = vand.u32 4294901760, %v7754_v37 }
  0xdb   :  { %6405 = vmatpush3.msra.mxu1 %v7399_v52  ;;  %6359 = vmatpush3.msra.mxu0 %v7383_v44  ;;  %v7758_v44 = vand.u32 4294901760, %v995_v30  ;;  %v1009_v52 = vsub.f32 %v7732_v28, %v7751_v36 }
  0xdc   :  { %6406 = vmatprep.subr.mxu1 %v7408_v57  ;;  %6360 = vmatprep.subr.mxu0 %v7396_v51 }
  0xdd   :  { %6407 = vmatpush3.msra.mxu1 %v7408_v57  ;;  %6361 = vmatpush3.msra.mxu0 %v7396_v51  ;;  %v7775_v51 = vand.u32 4294901760, %v1002_v34  ;;  %v959_v57 = vand.u32 4294901760, %v7766_v48  ;;  %v7794_v62 = vand.u32 4294901760, %v1009_v52 }
  0xde   :  { %6408 = vmatprep.subr.mxu1 %v7420_v63  ;;  %6362 = vmatprep.subr.mxu0 %v7414_v61 }
  0xdf   :  { %6409 = vmatpush3.msra.mxu1 %v7420_v63  ;;  %6363 = vmatpush3.msra.mxu0 %v7414_v61  ;;  %v8597_v61 = vld [vmem:[#allocation16_spill] sm:$0xff]  ;;  %v1016_v63 = vsub.f32 %v7754_v37, %v7780_v55 }
  0xe0   :  { %6410 = vmatprep.subr.mxu1 %v7432_v5  ;;  %6364 = vmatprep.subr.mxu0 %v7426_v3 }
  0xe1   :  { %6411 = vmatpush3.msra.mxu1 %v7432_v5  ;;  %6365 = vmatpush3.msra.mxu0 %v7426_v3  ;;  %v960_v3 = vsub.f32 %v7766_v48, %v959_v57  ;;  %v7813_v4 = vand.u32 4294901760, %v1016_v63 }
  0xe2   :  { %6412 = vmatprep.subr.mxu1 %v7444_v16  ;;  %6366 = vmatprep.subr.mxu0 %v7438_v11 }
  0xe3   :  { %6413 = vmatpush3.msra.mxu1 %v7444_v16  ;;  %6367 = vmatpush3.msra.mxu0 %v7438_v11  ;;  %v961_v5 = vand.u32 4294901760, %v960_v3  ;;  %v883_v11 = vld [vmem:[%s8578_s6] sm:$0xf]  ;;  %s7231_s6 = smov 64  }
  0xe4   :  { %6414 = vmatprep.subr.mxu1 %v7456_v38  ;;  %6368 = vmatprep.subr.mxu0 %v7450_v33 }
  0xe5   :  { %6415 = vmatpush3.msra.mxu1 %v7456_v38  ;;  %6369 = vmatpush3.msra.mxu0 %v7450_v33 }
  0xe6   :  { %6417 = vmatmul.mubr.msk.f32.vlgmr.msra.gmra.mxu1 %vm78_vm2, %v8594_v7  ;;  %6370 = vmatprep.subr.mxu0 %v7462_v41 }
  0xe7   :  { %6419 = vmatprep.mubr.msk.f32.mxu1 %vm79_vm1, %v8594_v7  ;;  %6371 = vmatpush3.msra.mxu0 %v7462_v41 }
  0xe8   :  { %6372 = vmatprep.subr.mxu0 %v7472_v46  ;;  %6433 = vmatprep.subr.mxu1 %v8595_v49 }
  0xe9   :  { %6373 = vmatpush3.msra.mxu0 %v7472_v46  ;;  %6434 = vmatpush3.msra.mxu1 %v7758_v44 }
  0xea   :  { %6420 = vmatmul.mubr.msk.f32.gmra.mxu1 %vm80_vm3, %v8594_v7  ;;  %6374 = vmatprep.subr.mxu0 %v8596_v56 }
  0xeb   :  { %6375 = vmatpush3.msra.mxu0 %v8596_v56  ;;  %6435 = vmatprep.subr.mxu1 %v8595_v49 }
  0xec   :  { %6376 = vmatprep.subr.mxu0 %v8597_v61  ;;  %6436 = vmatpush3.msra.mxu1 %v7775_v51 }
  0xed   :  { %6377 = vmatpush3.msra.mxu0 %v8597_v61  ;;  %6437 = vmatprep.subr.mxu1 %v8595_v49 }
  0xee   :  { %6379 = vmatmul.mubr.msk.f32.vlgmr.msra.gmra.mxu0 %vm78_vm2, %v8594_v7  ;;  %6422 = vmatprep.subr.mxu0 %v8595_v49 }
  0xef   :  { %6381 = vmatprep.mubr.msk.f32.mxu0 %vm79_vm1, %v8594_v7  ;;  %6423 = vmatpush3.msra.mxu0 %v7678_v12 }
  0xf0   :  { %6424 = vmatprep.subr.mxu0 %v8595_v49  ;;  %6438 = vmatpush3.msra.mxu1 %v7794_v62 }
  0xf1   :  { %6425 = vmatpush3.msra.mxu0 %v7689_v14  ;;  %6439 = vmatprep.subr.mxu1 %v8595_v49 }
  0xf2   :  { %6382 = vmatmul.mubr.msk.f32.gmra.mxu0 %vm80_vm3, %v8594_v7  ;;  %6426 = vmatprep.subr.mxu0 %v8595_v49 }
  0xf3   :  { %6427 = vmatpush3.msra.mxu0 %v7708_v22  ;;  %6430 = vmatprep.mubr.msk.f32.mxu0 %vm7229_vm5, %v8595_v49 }
  0xf4   :  { %6428 = vmatprep.subr.mxu0 %v8595_v49  ;;  %6440 = vmatpush3.msra.mxu1 %v7813_v4 }
  0xf5   :  { %6429 = vmatpush3.msra.mxu0 %v7734_v29  ;;  %6441 = vmatprep.mubr.msk.f32.mxu1 %vm7229_vm5, %v8595_v49 }
  0xf6   :  { %6431 = vmatmul.mubr.f32.vlgmr.msra.gmra.mxu0 %v961_v5  ;;  %6444 = vmatprep.subr.mxu0 %v8595_v49 }
  0xf7   :  { %6455 = vmatprep.subr.mxu1 %v8595_v49  ;;  %6442 = vmatmul.mubr.f32.vlgmr.msra.gmra.mxu1 %v7742_v31 }
  0xf8   :  { %6445 = vmatpush3.msra.mxu0 %v7694_v19  ;;  %6456 = vmatpush3.msra.mxu1 %v7678_v12 }
  0xf9   :  { %6446 = vmatprep.subr.mxu0 %v8595_v49  ;;  %6457 = vmatprep.subr.mxu1 %v8595_v49 }
  0xfa   :  { %6447 = vmatpush3.msra.mxu0 %v7706_v21  ;;  %6458 = vmatpush3.msra.mxu1 %v7689_v14 }
  0xfb   :  { %6448 = vmatprep.subr.mxu0 %v8595_v49  ;;  %6459 = vmatprep.subr.mxu1 %v8595_v49 }
  0xfc   :  { %6449 = vmatpush3.msra.mxu0 %v7732_v28  ;;  %6460 = vmatpush3.msra.mxu1 %v7708_v22 }
  0xfd   :  { %6450 = vmatprep.subr.mxu0 %v8595_v49  ;;  %6461 = vmatprep.subr.mxu1 %v8595_v49 }
  0xfe   :  { %6451 = vmatpush3.msra.mxu0 %v7754_v37  ;;  %6452 = vmatprep.mubr.msk.f32.mxu0 %vm7229_vm5, %v8595_v49 }
  0xff   :  { %6462 = vmatpush3.msra.mxu1 %v7734_v29  ;;  %6453 = vmatmul.mubr.f32.vlgmr.msra.gmra.mxu0 %v7766_v48 }
 0x100   :  { %6463 = vmatprep.mubr.msk.f32.mxu1 %vm7229_vm5, %v8595_v49  ;;  %6466 = vmatprep.subr.mxu0 %v8595_v49 }
 0x101   :  { %6477 = vmatprep.subr.mxu1 %v8595_v49  ;;  %6464 = vmatmul.mubr.f32.vlgmr.msra.gmra.mxu1 %v959_v57 }
 0x102   :  { %6467 = vmatpush3.msra.mxu0 %v7716_v24  ;;  %6478 = vmatpush3.msra.mxu1 %v7678_v12 }
 0x103   :  { %6468 = vmatprep.subr.mxu0 %v8595_v49  ;;  %6479 = vmatprep.subr.mxu1 %v8595_v49 }
 0x104   :  { %6469 = vmatpush3.msra.mxu0 %v7729_v27  ;;  %6480 = vmatpush3.msra.mxu1 %v7689_v14 }
 0x105   :  { %6470 = vmatprep.subr.mxu0 %v8595_v49  ;;  %6481 = vmatprep.subr.mxu1 %v8595_v49 }
 0x106   :  { %6471 = vmatpush3.msra.mxu0 %v7751_v36  ;;  %6482 = vmatpush3.msra.mxu1 %v7708_v22 }
 0x107   :  { %6472 = vmatprep.subr.mxu0 %v8595_v49  ;;  %6483 = vmatprep.subr.mxu1 %v8595_v49 }
 0x108   :  { %6473 = vmatpush3.msra.mxu0 %v7780_v55  ;;  %6474 = vmatprep.mubr.msk.f32.mxu0 %vm7229_vm5, %v8595_v49 }
 0x109   :  { %6484 = vmatpush3.msra.mxu1 %v7734_v29  ;;  %6485 = vmatprep.mubr.msk.f32.mxu1 %vm7229_vm5, %v8595_v49 }
 0x10a   :  { %6475 = vmatmul.mubr.f32.vlgmr.msra.gmra.mxu0 %v7742_v31  ;;  %6486 = vmatmul.mubr.f32.vlgmr.msra.gmra.mxu1 %v7742_v31 }
 0x10b   :  { %1383 = vrot.lane.b32.xlu1 %v883_v11, %s7230_s17  ;;  %6499 = vmatprep.subr.mxu1 %v8595_v49 }
 0x10c   :  { %6500 = vmatpush3.msra.mxu1 %v7758_v44  ;;  %6488 = vmatprep.subr.mxu0 %v8595_v49 }
 0x10d   :  { %6501 = vmatprep.subr.mxu1 %v8595_v49  ;;  %6507 = vmatprep.mubr.msk.f32.mxu1 %vm7229_vm5, %v8595_v49 }
 0x10e   :  { %6502 = vmatpush3.msra.mxu1 %v7775_v51  ;;  %6489 = vmatpush3.msra.mxu0 %v7678_v12 }
 0x10f   :  { %6503 = vmatprep.subr.mxu1 %v8595_v49  ;;  %6490 = vmatprep.subr.mxu0 %v8595_v49 }
 0x110   :  { %6504 = vmatpush3.msra.mxu1 %v7794_v62  ;;  %6491 = vmatpush3.msra.mxu0 %v7689_v14 }
 0x111   :  { %6505 = vmatprep.subr.mxu1 %v8595_v49  ;;  %6492 = vmatprep.subr.mxu0 %v8595_v49 }
 0x112   :  { %6506 = vmatpush3.msra.mxu1 %v7813_v4  ;;  %6493 = vmatpush3.msra.mxu0 %v7708_v22 }
 0x113   :  { %6521 = vmatprep.subr.mxu1 %v8595_v49  ;;  %6494 = vmatprep.subr.mxu0 %v8595_v49 }
 0x114   :  { %6495 = vmatpush3.msra.mxu0 %v7734_v29  ;;  %6496 = vmatprep.mubr.msk.f32.mxu0 %vm7229_vm5, %v8595_v49 }
 0x115   :  { %6510 = vmatprep.subr.mxu0 %v8595_v49 }
 0x160   :  { %v6266_v15 = vpop.f32.mrf.mxu1 }
 0x162   :  { %v373_v16 = vpop.f32.mrf.mxu1 }
 0x164   :  { %v6269_v38 = vpop.f32.mrf.mxu1 }
 0x166   :  { %v385_v46 = vpop.f32.mrf.mxu1 }
 0x169   :  { %v6228_v33 = vpop.f32.mrf.mxu0 }
 0x16a   :  { %v380_v35 = vadd.f32 %v6266_v15, %v6228_v33 }
 0x16b   :  { %v192_v41 = vpop.f32.mrf.mxu0 }
 0x16c   :  { %v374_v5 = vadd.f32 %v373_v16, %v192_v41 }
 0x16e   :  { %v6231_v42 = vpop.f32.mrf.mxu0 }
 0x16f   :  { %v392_v47 = vadd.f32 %v6269_v38, %v6231_v42 }
 0x170   :  { %v212_v54 = vpop.f32.mrf.mxu0 }
 0x171   :  { %v386_v39 = vadd.f32 %v385_v46, %v212_v54 }
 0x182   :  { %v6342_v40 = vpop.f32.mrf.mxu1 }
 0x184   :  { %v605_v50 = vpop.f32.mrf.mxu1 }
 0x187   :  { %v6345_v1 = vpop.f32.mrf.mxu1 }
 0x189   :  { %v621_v9 = vpop.f32.mrf.mxu1 }
 0x18c   :  { %v6304_v43 = vpop.f32.mrf.mxu0 }
 0x18d   :  { %v503_v58 = vadd.f32 %v6304_v43, %v380_v35 }
 0x18e   :  { %v495_v59 = vpop.f32.mrf.mxu0 }
 0x18f   :  { %v614_v0 = vadd.f32 %v6342_v40, %v503_v58  ;;  %v496_v33 = vadd.f32 %v495_v59, %v374_v5 }
 0x191   :  { %v6307_v2 = vpop.f32.mrf.mxu0  ;;  %v606_v46 = vadd.f32 %v605_v50, %v496_v33 }
 0x192   :  { %v517_v10 = vadd.f32 %v6307_v2, %v392_v47 }
 0x193   :  { %v509_v17 = vpop.f32.mrf.mxu0 }
 0x194   :  { %v510_v53 = vadd.f32 %v509_v17, %v386_v39  ;;  %v630_v6 = vadd.f32 %v6345_v1, %v517_v10 }
 0x196   :  { %v622_v45 = vadd.f32 %v621_v9, %v510_v53 }
 0x1a6   :  { %v6418_v60 = vpop.f32.mrf.mxu1 }
 0x1a8   :  { %v853_v18 = vpop.f32.mrf.mxu1 }
 0x1aa   :  { %v6421_v20 = vpop.f32.mrf.mxu1 }
 0x1ac   :  { %v865_v31 = vpop.f32.mrf.mxu1 }
 0x1ae   :  { %v6380_v7 = vpop.f32.mrf.mxu0 }
 0x1af   :  { %v755_v8 = vadd.f32 %v6380_v7, %v614_v0 }
 0x1b0   :  { %v748_v13 = vpop.f32.mrf.mxu0 }
 0x1b1   :  { %v7900_v23 = vadd.f32 %v6418_v60, %v755_v8  ;;  %v749_v47 = vadd.f32 %v748_v13, %v606_v46  ;;  %v1384_v60 = vpop.permute.xlu1 %1383 }
 0x1b2   :  { %v6383_v25 = vpop.f32.mrf.mxu0 }
 0x1b3   :  { %v767_v26 = vadd.f32 %v6383_v25, %v630_v6  ;;  %v7906_v1 = vadd.f32 %v853_v18, %v749_v47 }
 0x1b4   :  { %v760_v30 = vpop.f32.mrf.mxu0 }
 0x1b5   :  { %v7902_v34 = vadd.f32 %v6421_v20, %v767_v26  ;;  %v761_v48 = vadd.f32 %v760_v30, %v622_v45 }
 0x1b6   :  { %v963_v52 = vpop.f32.mrf.mxu0 }
 0x1b7   :  { %v7904_v56 = vadd.f32 %v865_v31, %v761_v48  ;;  %v1054_v57 = vpop.f32.mrf.mxu1 }
 0x1b8   :  { %v6432_v61 = vpop.f32.mrf.mxu0  ;;  %v1055_v35 = vadd.f32 %v1054_v57, %v963_v52 }
 0x1b9   :  { %v6443_v63 = vpop.f32.mrf.mxu1 }
 0x1bf   :  { %v1134_v3 = vpop.f32.mrf.mxu0 }
 0x1c0   :  { %v1135_v42 = vadd.f32 %v1134_v3, %v1055_v35 }
 0x1c1   :  { %v1211_v11 = vpop.f32.mrf.mxu1  ;;  %v6454_v15 = vpop.f32.mrf.mxu0 }
 0x1c2   :  { %v1212_v54 = vadd.f32 %v1211_v11, %v1135_v42 }
 0x1c3   :  { %v6465_v38 = vpop.f32.mrf.mxu1 }
 0x1ca   :  { %v1294_v39 = vpop.f32.mrf.mxu0  ;;  %v1369_v40 = vpop.f32.mrf.mxu1 }
 0x1cb   :  { %v1295_v43 = vadd.f32 %v1294_v39, %v1212_v54 }
 0x1cc   :  { %v6476_v58 = vpop.f32.mrf.mxu0  ;;  %v6487_v0 = vpop.f32.mrf.mxu1 }
 0x1cd   :  { %v1370_v2 = vadd.f32 %v1369_v40, %v1295_v43 }
 0x1cf   :  { %v1373_v10 = vadd.f32 %v1370_v2, %v7906_v1 }
 0x1d1   :  { %v5777_v16 = vmul.f32 -1.442695, %v1373_v10 }
 0x1d3   :  { %7050 = vpow2.f32 %v5777_v16 }
 0x1d4   :  { %7052 = vtanh.f32 %v1373_v10 }
 0x1e0   :  { %v7051_v41 = vpop.eup %7050 }
 0x1e1   :  { %v1377_v59 = vadd.f32 1.0, %v7051_v41  ;;  %v7053_v17 = vpop.eup %7052 }
 0x1e3   :  { %7054 = vrcp.f32 %v1377_v59 }
 0x1f0   :  { %v7055_v53 = vpop.eup %7054 }
 0x1f1   :  { %v1381_v6 = vsel %vm7911_vm8, %v7053_v17, %v7055_v53 }
 0x1f2   :  { %1388 = vrot.lane.b32.xlu0 %v1381_v6, %s7231_s6  ;;  %v1386_v18 = vmul.f32 %v1384_v60, %v1381_v6 }
 0x264   :  { %v1389_v9 = vpop.permute.xlu0 %1388 }
 0x265   :  { %v1391_v45 = vmul.f32 %v1389_v9, %v1381_v6 }
 0x267   :  { %1393 = vrot.lane.b32.xlu0 %v1391_v45, %s7230_s17 }
 0x2d9   :  { %v1394_v7 = vpop.permute.xlu0 %1393 }
 0x2da   :  { %v7919_v32 = vadd.f32 %v1394_v7, %v1386_v18 }
 0x2dc   :  { %7056 = vtanh.f32 %v7919_v32  ;;  %v1906_v45 = vrot.slane %v7919_v32, 4 }
 0x2e9   :  { %v7057_v8 = vpop.eup %7056 }
 0x2ea   :  { %1399 = vrot.lane.b32.xlu1 %v7057_v8, %s7231_s6 }
 0x35c   :  { %v1400_v13 = vpop.permute.xlu1 %1399 }
 0x35d   :  { %v7923_v20 = vmul.f32 %v1400_v13, %v1381_v6 }
 0x35f   :  { %1404 = vrot.lane.b32.xlu0 %v7923_v20, %s7230_s17 }
 0x3d1   :  { %v1405_v25 = vpop.permute.xlu0 %1404 }
 0x3d2   :  { %v1406_v26 = vsel %vm884_vm4, %v1405_v25, 0 }
 0x3d3   :  { %v1477_v30 = vand.u32 4294901760, %v1406_v26 }
 0x3d5   :  { %v1478_v31 = vsub.f32 %v1406_v26, %v1477_v30  ;;  %6508 = vmatmul.mubr.f32.vlgmr.msra.gmra.mxu1 %v1477_v30 }
 0x3d6   :  { %6522 = vmatpush3.msra.mxu1 %v7678_v12  ;;  %6529 = vmatprep.mubr.msk.f32.mxu1 %vm7229_vm5, %v8595_v49 }
 0x3d7   :  { %v1479_v48 = vand.u32 4294901760, %v1478_v31  ;;  %6523 = vmatprep.subr.mxu1 %v8595_v49 }
 0x3d8   :  { %6524 = vmatpush3.msra.mxu1 %v7689_v14 }
 0x3d9   :  { %v1480_v52 = vsub.f32 %v1478_v31, %v1479_v48  ;;  %6525 = vmatprep.subr.mxu1 %v8595_v49 }
 0x3da   :  { %6526 = vmatpush3.msra.mxu1 %v7708_v22 }
 0x3db   :  { %v1481_v57 = vand.u32 4294901760, %v1480_v52  ;;  %6527 = vmatprep.subr.mxu1 %v8595_v49 }
 0x3dc   :  { %6528 = vmatpush3.msra.mxu1 %v7734_v29 }
 0x3dd   :  { %6530 = vmatmul.mubr.f32.vlgmr.msra.gmra.mxu1 %v1479_v48  ;;  %6543 = vmatprep.subr.mxu1 %v8595_v49 }
 0x3de   :  { %6497 = vmatmul.mubr.f32.vlgmr.msra.gmra.mxu0 %v1481_v57  ;;  %6544 = vmatpush3.msra.mxu1 %v7678_v12 }
 0x3df   :  { %6511 = vmatpush3.msra.mxu0 %v7694_v19  ;;  %6545 = vmatprep.subr.mxu1 %v8595_v49 }
 0x3e0   :  { %6512 = vmatprep.subr.mxu0 %v8595_v49  ;;  %6546 = vmatpush3.msra.mxu1 %v7689_v14 }
 0x3e1   :  { %6513 = vmatpush3.msra.mxu0 %v7706_v21  ;;  %6547 = vmatprep.subr.mxu1 %v8595_v49 }
 0x3e2   :  { %6514 = vmatprep.subr.mxu0 %v8595_v49  ;;  %6548 = vmatpush3.msra.mxu1 %v7708_v22 }
 0x3e3   :  { %6515 = vmatpush3.msra.mxu0 %v7732_v28  ;;  %6549 = vmatprep.subr.mxu1 %v8595_v49 }
 0x3e4   :  { %6516 = vmatprep.subr.mxu0 %v8595_v49  ;;  %6518 = vmatprep.mubr.msk.f32.mxu0 %vm7229_vm5, %v8595_v49 }
 0x3e5   :  { %6517 = vmatpush3.msra.mxu0 %v7754_v37  ;;  %6550 = vmatpush3.msra.mxu1 %v7734_v29 }
 0x3e6   :  { %6551 = vmatprep.mubr.msk.f32.mxu1 %vm7229_vm5, %v8595_v49  ;;  %6519 = vmatmul.mubr.f32.vlgmr.msra.gmra.mxu0 %v1478_v31 }
 0x3e7   :  { %6532 = vmatprep.subr.mxu0 %v8595_v49  ;;  %6552 = vmatmul.mubr.f32.vlgmr.msra.gmra.mxu1 %v1477_v30 }
 0x3e8   :  { %6533 = vmatpush3.msra.mxu0 %v7716_v24  ;;  %6540 = vmatprep.mubr.msk.f32.mxu0 %vm7229_vm5, %v8595_v49 }
 0x3e9   :  { %6534 = vmatprep.subr.mxu0 %v8595_v49  ;;  %6565 = vmatprep.subr.mxu1 %v8595_v49 }
 0x3ea   :  { %6535 = vmatpush3.msra.mxu0 %v7729_v27  ;;  %6566 = vmatpush3.msra.mxu1 %v7758_v44 }
 0x3eb   :  { %6536 = vmatprep.subr.mxu0 %v8595_v49  ;;  %6567 = vmatprep.subr.mxu1 %v8595_v49 }
 0x3ec   :  { %6537 = vmatpush3.msra.mxu0 %v7751_v36  ;;  %6568 = vmatpush3.msra.mxu1 %v7775_v51 }
 0x3ed   :  { %6538 = vmatprep.subr.mxu0 %v8595_v49  ;;  %6569 = vmatprep.subr.mxu1 %v8595_v49 }
 0x3ee   :  { %6539 = vmatpush3.msra.mxu0 %v7780_v55  ;;  %6570 = vmatpush3.msra.mxu1 %v7794_v62 }
 0x3ef   :  { %6541 = vmatmul.mubr.f32.vlgmr.msra.gmra.mxu0 %v1477_v30  ;;  %6571 = vmatprep.subr.mxu1 %v8595_v49 }
 0x3f0   :  { %6572 = vmatpush3.msra.mxu1 %v7813_v4  ;;  %6554 = vmatprep.subr.mxu0 %v8595_v49 }
 0x3f1   :  { %6573 = vmatprep.mubr.msk.f32.mxu1 %vm7229_vm5, %v8595_v49  ;;  %6587 = vmatprep.subr.mxu1 %v8595_v49 }
 0x3f2   :  { %6555 = vmatpush3.msra.mxu0 %v7678_v12  ;;  %6562 = vmatprep.mubr.msk.f32.mxu0 %vm7229_vm5, %v8595_v49 }
 0x3f3   :  { %6556 = vmatprep.subr.mxu0 %v8595_v49 }
 0x3f4   :  { %6557 = vmatpush3.msra.mxu0 %v7689_v14 }
 0x3f5   :  { %6558 = vmatprep.subr.mxu0 %v8595_v49 }
 0x3f6   :  { %6559 = vmatpush3.msra.mxu0 %v7708_v22 }
 0x3f7   :  { %6560 = vmatprep.subr.mxu0 %v8595_v49 }
 0x3f8   :  { %6561 = vmatpush3.msra.mxu0 %v7734_v29 }
 0x3f9   :  { %6576 = vmatprep.subr.mxu0 %v8595_v49 }
 0x495   :  { %v1574_v61 = vpop.f32.mrf.mxu1 }
 0x497   :  { %v6509_v63 = vpop.f32.mrf.mxu1 }
 0x49d   :  { %v1731_v3 = vpop.f32.mrf.mxu1 }
 0x49e   :  { %v1483_v5 = vpop.f32.mrf.mxu0 }
 0x49f   :  { %v6531_v11 = vpop.f32.mrf.mxu1  ;;  %v1575_v38 = vadd.f32 %v1574_v61, %v1483_v5 }
 0x4a0   :  { %v6498_v15 = vpop.f32.mrf.mxu0 }
 0x4a6   :  { %v1654_v33 = vpop.f32.mrf.mxu0 }
 0x4a7   :  { %v1889_v35 = vpop.f32.mrf.mxu1  ;;  %v1655_v47 = vadd.f32 %v1654_v33, %v1575_v38 }
 0x4a8   :  { %v6520_v42 = vpop.f32.mrf.mxu0 }
 0x4a9   :  { %v6553_v46 = vpop.f32.mrf.mxu1  ;;  %v1732_v54 = vadd.f32 %v1731_v3, %v1655_v47 }
 0x4af   :  { %v1814_v39 = vpop.f32.mrf.mxu0 }
 0x4b0   :  { %v1815_v40 = vadd.f32 %v1814_v39, %v1732_v54 }
 0x4b1   :  { %v6542_v43 = vpop.f32.mrf.mxu0 }
 0x4b2   :  { %v1890_v58 = vadd.f32 %v1889_v35, %v1815_v40 }
 0x4b4   :  { %v1894_v0 = vrot.slane %v1890_v58, 4 }
 0x4b6   :  { %v1896_v2 = vadd.f32 %v1894_v0, %v7906_v1 }
 0x4b8   :  { %v5778_v10 = vmul.f32 -1.442695, %v1896_v2 }
 0x4ba   :  { %7058 = vpow2.f32 %v5778_v10 }
 0x4bb   :  { %7060 = vtanh.f32 %v1896_v2 }
 0x4c7   :  { %v7059_v16 = vpop.eup %7058 }
 0x4c8   :  { %v1900_v41 = vadd.f32 1.0, %v7059_v16  ;;  %v7061_v59 = vpop.eup %7060 }
 0x4ca   :  { %7062 = vrcp.f32 %v1900_v41 }
 0x4d7   :  { %v7063_v17 = vpop.eup %7062 }
 0x4d8   :  { %v1904_v53 = vsel %vm7911_vm8, %v7061_v59, %v7063_v17 }
 0x4d9   :  { %1910 = vrot.lane.b32.xlu1 %v1904_v53, %s7231_s6  ;;  %v1908_v1 = vmul.f32 %v1906_v45, %v1904_v53 }
 0x54b   :  { %v1911_v6 = vpop.permute.xlu1 %1910 }
 0x54c   :  { %v1913_v9 = vmul.f32 %v1911_v6, %v1904_v53 }
 0x54e   :  { %1915 = vrot.lane.b32.xlu0 %v1913_v9, %s7230_s17 }
 0x5c0   :  { %v1916_v60 = vpop.permute.xlu0 %1915 }
 0x5c1   :  { %v7994_v18 = vadd.f32 %v1916_v60, %v1908_v1 }
 0x5c3   :  { %7064 = vtanh.f32 %v7994_v18  ;;  %v2426_v9 = vrot.slane %v7994_v18, 4 }
 0x5d0   :  { %v7065_v7 = vpop.eup %7064 }
 0x5d1   :  { %1921 = vrot.lane.b32.xlu1 %v7065_v7, %s7231_s6 }
 0x643   :  { %v1922_v8 = vpop.permute.xlu1 %1921 }
 0x644   :  { %v7998_v13 = vmul.f32 %v1922_v8, %v1904_v53 }
 0x646   :  { %v1926_v25 = vrot.slane %v7998_v13, 4 }
 0x648   :  { %1927 = vrot.lane.b32.xlu0 %v1926_v25, %s7230_s17 }
 0x6ba   :  { %v1928_v26 = vpop.permute.xlu0 %1927 }
 0x6bb   :  { %v1929_v30 = vsel %vm884_vm4, %v1928_v26, 0 }
 0x6bc   :  { %v2000_v32 = vand.u32 4294901760, %v1929_v30 }
 0x6be   :  { %v2001_v31 = vsub.f32 %v1929_v30, %v2000_v32  ;;  %6574 = vmatmul.mubr.f32.vlgmr.msra.gmra.mxu1 %v2000_v32 }
 0x6bf   :  { %6588 = vmatpush3.msra.mxu1 %v7678_v12  ;;  %6595 = vmatprep.mubr.msk.f32.mxu1 %vm7229_vm5, %v8595_v49 }
 0x6c0   :  { %v2002_v48 = vand.u32 4294901760, %v2001_v31  ;;  %6589 = vmatprep.subr.mxu1 %v8595_v49 }
 0x6c1   :  { %6590 = vmatpush3.msra.mxu1 %v7689_v14 }
 0x6c2   :  { %v2003_v52 = vsub.f32 %v2001_v31, %v2002_v48  ;;  %6591 = vmatprep.subr.mxu1 %v8595_v49 }
 0x6c3   :  { %6592 = vmatpush3.msra.mxu1 %v7708_v22 }
 0x6c4   :  { %v2004_v57 = vand.u32 4294901760, %v2003_v52  ;;  %6593 = vmatprep.subr.mxu1 %v8595_v49 }
 0x6c5   :  { %6594 = vmatpush3.msra.mxu1 %v7734_v29 }
 0x6c6   :  { %6596 = vmatmul.mubr.f32.vlgmr.msra.gmra.mxu1 %v2002_v48  ;;  %6609 = vmatprep.subr.mxu1 %v8595_v49 }
 0x6c7   :  { %6563 = vmatmul.mubr.f32.vlgmr.msra.gmra.mxu0 %v2004_v57  ;;  %6610 = vmatpush3.msra.mxu1 %v7678_v12 }
 0x6c8   :  { %6577 = vmatpush3.msra.mxu0 %v7694_v19  ;;  %6611 = vmatprep.subr.mxu1 %v8595_v49 }
 0x6c9   :  { %6578 = vmatprep.subr.mxu0 %v8595_v49  ;;  %6612 = vmatpush3.msra.mxu1 %v7689_v14 }
 0x6ca   :  { %6579 = vmatpush3.msra.mxu0 %v7706_v21  ;;  %6613 = vmatprep.subr.mxu1 %v8595_v49 }
 0x6cb   :  { %6580 = vmatprep.subr.mxu0 %v8595_v49  ;;  %6614 = vmatpush3.msra.mxu1 %v7708_v22 }
 0x6cc   :  { %6581 = vmatpush3.msra.mxu0 %v7732_v28  ;;  %6615 = vmatprep.subr.mxu1 %v8595_v49 }
 0x6cd   :  { %6582 = vmatprep.subr.mxu0 %v8595_v49  ;;  %6584 = vmatprep.mubr.msk.f32.mxu0 %vm7229_vm5, %v8595_v49 }
 0x6ce   :  { %6583 = vmatpush3.msra.mxu0 %v7754_v37  ;;  %6616 = vmatpush3.msra.mxu1 %v7734_v29 }
 0x6cf   :  { %6617 = vmatprep.mubr.msk.f32.mxu1 %vm7229_vm5, %v8595_v49  ;;  %6585 = vmatmul.mubr.f32.vlgmr.msra.gmra.mxu0 %v2001_v31 }
 0x6d0   :  { %6598 = vmatprep.subr.mxu0 %v8595_v49  ;;  %6618 = vmatmul.mubr.f32.vlgmr.msra.gmra.mxu1 %v2000_v32 }
 0x6d1   :  { %6599 = vmatpush3.msra.mxu0 %v7716_v24  ;;  %6606 = vmatprep.mubr.msk.f32.mxu0 %vm7229_vm5, %v8595_v49 }
 0x6d2   :  { %6600 = vmatprep.subr.mxu0 %v8595_v49  ;;  %6631 = vmatprep.subr.mxu1 %v8595_v49 }
 0x6d3   :  { %6601 = vmatpush3.msra.mxu0 %v7729_v27  ;;  %6632 = vmatpush3.msra.mxu1 %v7758_v44 }
 0x6d4   :  { %6602 = vmatprep.subr.mxu0 %v8595_v49  ;;  %6633 = vmatprep.subr.mxu1 %v8595_v49 }
 0x6d5   :  { %6603 = vmatpush3.msra.mxu0 %v7751_v36  ;;  %6634 = vmatpush3.msra.mxu1 %v7775_v51 }
 0x6d6   :  { %6604 = vmatprep.subr.mxu0 %v8595_v49  ;;  %6635 = vmatprep.subr.mxu1 %v8595_v49 }
 0x6d7   :  { %6605 = vmatpush3.msra.mxu0 %v7780_v55  ;;  %6636 = vmatpush3.msra.mxu1 %v7794_v62 }
 0x6d8   :  { %6607 = vmatmul.mubr.f32.vlgmr.msra.gmra.mxu0 %v2000_v32  ;;  %6637 = vmatprep.subr.mxu1 %v8595_v49 }
 0x6d9   :  { %6638 = vmatpush3.msra.mxu1 %v7813_v4  ;;  %6620 = vmatprep.subr.mxu0 %v8595_v49 }
 0x6da   :  { %6639 = vmatprep.mubr.msk.f32.mxu1 %vm7229_vm5, %v8595_v49  ;;  %6653 = vmatprep.subr.mxu1 %v8595_v49 }
 0x6db   :  { %6621 = vmatpush3.msra.mxu0 %v7678_v12  ;;  %6628 = vmatprep.mubr.msk.f32.mxu0 %vm7229_vm5, %v8595_v49 }
 0x6dc   :  { %6622 = vmatprep.subr.mxu0 %v8595_v49 }
 0x6dd   :  { %6623 = vmatpush3.msra.mxu0 %v7689_v14 }
 0x6de   :  { %6624 = vmatprep.subr.mxu0 %v8595_v49 }
 0x6df   :  { %6625 = vmatpush3.msra.mxu0 %v7708_v22 }
 0x6e0   :  { %6626 = vmatprep.subr.mxu0 %v8595_v49 }
 0x6e1   :  { %6627 = vmatpush3.msra.mxu0 %v7734_v29 }
 0x6e2   :  { %6642 = vmatprep.subr.mxu0 %v8595_v49 }
 0x77e   :  { %v2097_v61 = vpop.f32.mrf.mxu1 }
 0x780   :  { %v6575_v63 = vpop.f32.mrf.mxu1 }
 0x786   :  { %v2254_v3 = vpop.f32.mrf.mxu1 }
 0x787   :  { %v2006_v5 = vpop.f32.mrf.mxu0 }
 0x788   :  { %v6597_v11 = vpop.f32.mrf.mxu1  ;;  %v2098_v38 = vadd.f32 %v2097_v61, %v2006_v5 }
 0x789   :  { %v6564_v15 = vpop.f32.mrf.mxu0 }
 0x78f   :  { %v2177_v33 = vpop.f32.mrf.mxu0 }
 0x790   :  { %v2412_v35 = vpop.f32.mrf.mxu1  ;;  %v2178_v47 = vadd.f32 %v2177_v33, %v2098_v38 }
 0x791   :  { %v6586_v42 = vpop.f32.mrf.mxu0 }
 0x792   :  { %v6619_v46 = vpop.f32.mrf.mxu1  ;;  %v2255_v54 = vadd.f32 %v2254_v3, %v2178_v47 }
 0x798   :  { %v2337_v39 = vpop.f32.mrf.mxu0 }
 0x799   :  { %v2338_v40 = vadd.f32 %v2337_v39, %v2255_v54 }
 0x79a   :  { %v6608_v43 = vpop.f32.mrf.mxu0 }
 0x79b   :  { %v2413_v58 = vadd.f32 %v2412_v35, %v2338_v40 }
 0x79d   :  { %v2416_v0 = vadd.f32 %v2413_v58, %v7900_v23 }
 0x79f   :  { %v5779_v2 = vmul.f32 -1.442695, %v2416_v0 }
 0x7a1   :  { %7066 = vpow2.f32 %v5779_v2 }
 0x7a2   :  { %7068 = vtanh.f32 %v2416_v0 }
 0x7ae   :  { %v7067_v10 = vpop.eup %7066 }
 0x7af   :  { %v2420_v16 = vadd.f32 1.0, %v7067_v10  ;;  %v7069_v41 = vpop.eup %7068 }
 0x7b1   :  { %7070 = vrcp.f32 %v2420_v16 }
 0x7be   :  { %v7071_v59 = vpop.eup %7070 }
 0x7bf   :  { %v2424_v17 = vsel %vm7911_vm8, %v7069_v41, %v7071_v59 }
 0x7c0   :  { %2430 = vrot.lane.b32.xlu1 %v2424_v17, %s7231_s6  ;;  %v2428_v45 = vmul.f32 %v2426_v9, %v2424_v17 }
 0x832   :  { %v2431_v53 = vpop.permute.xlu1 %2430 }
 0x833   :  { %v2433_v6 = vmul.f32 %v2431_v53, %v2424_v17 }
 0x835   :  { %2435 = vrot.lane.b32.xlu0 %v2433_v6, %s7230_s17 }
 0x8a7   :  { %v2436_v1 = vpop.permute.xlu0 %2435 }
 0x8a8   :  { %v8069_v60 = vadd.f32 %v2436_v1, %v2428_v45 }
 0x8aa   :  { %7072 = vtanh.f32 %v8069_v60  ;;  %v2948_v9 = vrot.slane %v8069_v60, 4 }
 0x8b7   :  { %v7073_v7 = vpop.eup %7072 }
 0x8b8   :  { %2441 = vrot.lane.b32.xlu1 %v7073_v7, %s7231_s6 }
 0x92a   :  { %v2442_v8 = vpop.permute.xlu1 %2441 }
 0x92b   :  { %v8073_v25 = vmul.f32 %v2442_v8, %v2424_v17 }
 0x92d   :  { %2446 = vrot.lane.b32.xlu0 %v8073_v25, %s7230_s17 }
 0x99f   :  { %v2447_v26 = vpop.permute.xlu0 %2446 }
 0x9a0   :  { %v2448_v30 = vsel %vm884_vm4, %v2447_v26, 0 }
 0x9a1   :  { %v2519_v32 = vand.u32 4294901760, %v2448_v30 }
 0x9a3   :  { %v2520_v18 = vsub.f32 %v2448_v30, %v2519_v32  ;;  %6640 = vmatmul.mubr.f32.vlgmr.msra.gmra.mxu1 %v2519_v32 }
 0x9a4   :  { %6654 = vmatpush3.msra.mxu1 %v7678_v12  ;;  %6661 = vmatprep.mubr.msk.f32.mxu1 %vm7229_vm5, %v8595_v49 }
 0x9a5   :  { %v2521_v31 = vand.u32 4294901760, %v2520_v18  ;;  %6655 = vmatprep.subr.mxu1 %v8595_v49 }
 0x9a6   :  { %6656 = vmatpush3.msra.mxu1 %v7689_v14 }
 0x9a7   :  { %v2522_v48 = vsub.f32 %v2520_v18, %v2521_v31  ;;  %6657 = vmatprep.subr.mxu1 %v8595_v49 }
 0x9a8   :  { %6658 = vmatpush3.msra.mxu1 %v7708_v22 }
 0x9a9   :  { %v2523_v52 = vand.u32 4294901760, %v2522_v48  ;;  %6659 = vmatprep.subr.mxu1 %v8595_v49 }
 0x9aa   :  { %6660 = vmatpush3.msra.mxu1 %v7734_v29 }
 0x9ab   :  { %6662 = vmatmul.mubr.f32.vlgmr.msra.gmra.mxu1 %v2521_v31  ;;  %6675 = vmatprep.subr.mxu1 %v8595_v49 }
 0x9ac   :  { %6629 = vmatmul.mubr.f32.vlgmr.msra.gmra.mxu0 %v2523_v52  ;;  %6676 = vmatpush3.msra.mxu1 %v7678_v12 }
 0x9ad   :  { %6643 = vmatpush3.msra.mxu0 %v7694_v19  ;;  %6677 = vmatprep.subr.mxu1 %v8595_v49 }
 0x9ae   :  { %6644 = vmatprep.subr.mxu0 %v8595_v49  ;;  %6678 = vmatpush3.msra.mxu1 %v7689_v14 }
 0x9af   :  { %6645 = vmatpush3.msra.mxu0 %v7706_v21  ;;  %6679 = vmatprep.subr.mxu1 %v8595_v49 }
 0x9b0   :  { %6646 = vmatprep.subr.mxu0 %v8595_v49  ;;  %6680 = vmatpush3.msra.mxu1 %v7708_v22 }
 0x9b1   :  { %6647 = vmatpush3.msra.mxu0 %v7732_v28  ;;  %6681 = vmatprep.subr.mxu1 %v8595_v49 }
 0x9b2   :  { %6648 = vmatprep.subr.mxu0 %v8595_v49  ;;  %6650 = vmatprep.mubr.msk.f32.mxu0 %vm7229_vm5, %v8595_v49 }
 0x9b3   :  { %6649 = vmatpush3.msra.mxu0 %v7754_v37  ;;  %6682 = vmatpush3.msra.mxu1 %v7734_v29 }
 0x9b4   :  { %6683 = vmatprep.mubr.msk.f32.mxu1 %vm7229_vm5, %v8595_v49  ;;  %6651 = vmatmul.mubr.f32.vlgmr.msra.gmra.mxu0 %v2520_v18 }
 0x9b5   :  { %6664 = vmatprep.subr.mxu0 %v8595_v49  ;;  %6684 = vmatmul.mubr.f32.vlgmr.msra.gmra.mxu1 %v2519_v32 }
 0x9b6   :  { %6665 = vmatpush3.msra.mxu0 %v7716_v24  ;;  %6672 = vmatprep.mubr.msk.f32.mxu0 %vm7229_vm5, %v8595_v49 }
 0x9b7   :  { %6666 = vmatprep.subr.mxu0 %v8595_v49  ;;  %6697 = vmatprep.subr.mxu1 %v8595_v49 }
 0x9b8   :  { %6667 = vmatpush3.msra.mxu0 %v7729_v27  ;;  %6698 = vmatpush3.msra.mxu1 %v7758_v44 }
 0x9b9   :  { %6668 = vmatprep.subr.mxu0 %v8595_v49  ;;  %6699 = vmatprep.subr.mxu1 %v8595_v49 }
 0x9ba   :  { %6669 = vmatpush3.msra.mxu0 %v7751_v36  ;;  %6700 = vmatpush3.msra.mxu1 %v7775_v51 }
 0x9bb   :  { %6670 = vmatprep.subr.mxu0 %v8595_v49  ;;  %6701 = vmatprep.subr.mxu1 %v8595_v49 }
 0x9bc   :  { %6671 = vmatpush3.msra.mxu0 %v7780_v55  ;;  %6702 = vmatpush3.msra.mxu1 %v7794_v62 }
 0x9bd   :  { %6673 = vmatmul.mubr.f32.vlgmr.msra.gmra.mxu0 %v2519_v32  ;;  %6703 = vmatprep.subr.mxu1 %v8595_v49 }
 0x9be   :  { %6704 = vmatpush3.msra.mxu1 %v7813_v4  ;;  %6686 = vmatprep.subr.mxu0 %v8595_v49 }
 0x9bf   :  { %6705 = vmatprep.mubr.msk.f32.mxu1 %vm7229_vm5, %v8595_v49  ;;  %6719 = vmatprep.subr.mxu1 %v8595_v49 }
 0x9c0   :  { %6687 = vmatpush3.msra.mxu0 %v7678_v12  ;;  %6694 = vmatprep.mubr.msk.f32.mxu0 %vm7229_vm5, %v8595_v49 }
 0x9c1   :  { %6688 = vmatprep.subr.mxu0 %v8595_v49 }
 0x9c2   :  { %6689 = vmatpush3.msra.mxu0 %v7689_v14 }
 0x9c3   :  { %6690 = vmatprep.subr.mxu0 %v8595_v49 }
 0x9c4   :  { %6691 = vmatpush3.msra.mxu0 %v7708_v22 }
 0x9c5   :  { %6692 = vmatprep.subr.mxu0 %v8595_v49 }
 0x9c6   :  { %6693 = vmatpush3.msra.mxu0 %v7734_v29 }
 0x9c7   :  { %6708 = vmatprep.subr.mxu0 %v8595_v49 }
 0xa63   :  { %v2616_v57 = vpop.f32.mrf.mxu1 }
 0xa65   :  { %v6641_v61 = vpop.f32.mrf.mxu1 }
 0xa6b   :  { %v2773_v63 = vpop.f32.mrf.mxu1 }
 0xa6c   :  { %v2525_v3 = vpop.f32.mrf.mxu0 }
 0xa6d   :  { %v6663_v5 = vpop.f32.mrf.mxu1  ;;  %v2617_v35 = vadd.f32 %v2616_v57, %v2525_v3 }
 0xa6e   :  { %v6630_v11 = vpop.f32.mrf.mxu0 }
 0xa74   :  { %v2696_v15 = vpop.f32.mrf.mxu0 }
 0xa75   :  { %v2931_v33 = vpop.f32.mrf.mxu1  ;;  %v2697_v46 = vadd.f32 %v2696_v15, %v2617_v35 }
 0xa76   :  { %v6652_v38 = vpop.f32.mrf.mxu0 }
 0xa77   :  { %v6685_v42 = vpop.f32.mrf.mxu1  ;;  %v2774_v47 = vadd.f32 %v2773_v63, %v2697_v46 }
 0xa7d   :  { %v2856_v54 = vpop.f32.mrf.mxu0 }
 0xa7e   :  { %v2857_v39 = vadd.f32 %v2856_v54, %v2774_v47 }
 0xa7f   :  { %v6674_v40 = vpop.f32.mrf.mxu0 }
 0xa80   :  { %v2932_v43 = vadd.f32 %v2931_v33, %v2857_v39 }
 0xa82   :  { %v2936_v58 = vrot.slane %v2932_v43, 4 }
 0xa84   :  { %v2938_v0 = vadd.f32 %v2936_v58, %v7900_v23 }
 0xa86   :  { %v5780_v2 = vmul.f32 -1.442695, %v2938_v0 }
 0xa88   :  { %7074 = vpow2.f32 %v5780_v2 }
 0xa89   :  { %7076 = vtanh.f32 %v2938_v0 }
 0xa95   :  { %v7075_v10 = vpop.eup %7074 }
 0xa96   :  { %v2942_v16 = vadd.f32 1.0, %v7075_v10  ;;  %v7077_v41 = vpop.eup %7076 }
 0xa98   :  { %7078 = vrcp.f32 %v2942_v16 }
 0xaa5   :  { %v7079_v59 = vpop.eup %7078 }
 0xaa6   :  { %v2946_v17 = vsel %vm7911_vm8, %v7077_v41, %v7079_v59 }
 0xaa7   :  { %2952 = vrot.lane.b32.xlu1 %v2946_v17, %s7231_s6  ;;  %v2950_v23 = vmul.f32 %v2948_v9, %v2946_v17 }
 0xb19   :  { %v2953_v53 = vpop.permute.xlu1 %2952 }
 0xb1a   :  { %v2955_v6 = vmul.f32 %v2953_v53, %v2946_v17 }
 0xb1c   :  { %2957 = vrot.lane.b32.xlu0 %v2955_v6, %s7230_s17 }
 0xb8e   :  { %v2958_v45 = vpop.permute.xlu0 %2957 }
 0xb8f   :  { %v8144_v1 = vadd.f32 %v2958_v45, %v2950_v23 }
 0xb91   :  { %7080 = vtanh.f32 %v8144_v1  ;;  %v3468_v9 = vrot.slane %v8144_v1, 4 }
 0xb9e   :  { %v7081_v7 = vpop.eup %7080 }
 0xb9f   :  { %2963 = vrot.lane.b32.xlu1 %v7081_v7, %s7231_s6 }
 0xc11   :  { %v2964_v8 = vpop.permute.xlu1 %2963 }
 0xc12   :  { %v8148_v26 = vmul.f32 %v2964_v8, %v2946_v17 }
 0xc14   :  { %v2968_v30 = vrot.slane %v8148_v26, 4 }
 0xc16   :  { %2969 = vrot.lane.b32.xlu0 %v2968_v30, %s7230_s17 }
 0xc88   :  { %v2970_v32 = vpop.permute.xlu0 %2969 }
 0xc89   :  { %v2971_v18 = vsel %vm884_vm4, %v2970_v32, 0 }
 0xc8a   :  { %v3042_v60 = vand.u32 4294901760, %v2971_v18 }
 0xc8c   :  { %v3043_v31 = vsub.f32 %v2971_v18, %v3042_v60  ;;  %6706 = vmatmul.mubr.f32.vlgmr.msra.gmra.mxu1 %v3042_v60 }
 0xc8d   :  { %6720 = vmatpush3.msra.mxu1 %v7678_v12  ;;  %6727 = vmatprep.mubr.msk.f32.mxu1 %vm7229_vm5, %v8595_v49 }
 0xc8e   :  { %v3044_v48 = vand.u32 4294901760, %v3043_v31  ;;  %6721 = vmatprep.subr.mxu1 %v8595_v49 }
 0xc8f   :  { %6722 = vmatpush3.msra.mxu1 %v7689_v14 }
 0xc90   :  { %v3045_v52 = vsub.f32 %v3043_v31, %v3044_v48  ;;  %6723 = vmatprep.subr.mxu1 %v8595_v49 }
 0xc91   :  { %6724 = vmatpush3.msra.mxu1 %v7708_v22 }
 0xc92   :  { %v3046_v57 = vand.u32 4294901760, %v3045_v52  ;;  %6725 = vmatprep.subr.mxu1 %v8595_v49 }
 0xc93   :  { %6726 = vmatpush3.msra.mxu1 %v7734_v29 }
 0xc94   :  { %6728 = vmatmul.mubr.f32.vlgmr.msra.gmra.mxu1 %v3044_v48  ;;  %6741 = vmatprep.subr.mxu1 %v8595_v49 }
 0xc95   :  { %6695 = vmatmul.mubr.f32.vlgmr.msra.gmra.mxu0 %v3046_v57  ;;  %6742 = vmatpush3.msra.mxu1 %v7678_v12 }
 0xc96   :  { %6709 = vmatpush3.msra.mxu0 %v7694_v19  ;;  %6743 = vmatprep.subr.mxu1 %v8595_v49 }
 0xc97   :  { %6710 = vmatprep.subr.mxu0 %v8595_v49  ;;  %6744 = vmatpush3.msra.mxu1 %v7689_v14 }
 0xc98   :  { %6711 = vmatpush3.msra.mxu0 %v7706_v21  ;;  %6745 = vmatprep.subr.mxu1 %v8595_v49 }
 0xc99   :  { %6712 = vmatprep.subr.mxu0 %v8595_v49  ;;  %6746 = vmatpush3.msra.mxu1 %v7708_v22 }
 0xc9a   :  { %6713 = vmatpush3.msra.mxu0 %v7732_v28  ;;  %6747 = vmatprep.subr.mxu1 %v8595_v49 }
 0xc9b   :  { %6714 = vmatprep.subr.mxu0 %v8595_v49  ;;  %6716 = vmatprep.mubr.msk.f32.mxu0 %vm7229_vm5, %v8595_v49 }
 0xc9c   :  { %6715 = vmatpush3.msra.mxu0 %v7754_v37  ;;  %6748 = vmatpush3.msra.mxu1 %v7734_v29 }
 0xc9d   :  { %6749 = vmatprep.mubr.msk.f32.mxu1 %vm7229_vm5, %v8595_v49  ;;  %6717 = vmatmul.mubr.f32.vlgmr.msra.gmra.mxu0 %v3043_v31 }
 0xc9e   :  { %6730 = vmatprep.subr.mxu0 %v8595_v49  ;;  %6750 = vmatmul.mubr.f32.vlgmr.msra.gmra.mxu1 %v3042_v60 }
 0xc9f   :  { %6731 = vmatpush3.msra.mxu0 %v7716_v24  ;;  %6738 = vmatprep.mubr.msk.f32.mxu0 %vm7229_vm5, %v8595_v49 }
 0xca0   :  { %6732 = vmatprep.subr.mxu0 %v8595_v49  ;;  %6763 = vmatprep.subr.mxu1 %v8595_v49 }
 0xca1   :  { %6733 = vmatpush3.msra.mxu0 %v7729_v27  ;;  %6764 = vmatpush3.msra.mxu1 %v7758_v44 }
 0xca2   :  { %6734 = vmatprep.subr.mxu0 %v8595_v49  ;;  %6765 = vmatprep.subr.mxu1 %v8595_v49 }
 0xca3   :  { %6735 = vmatpush3.msra.mxu0 %v7751_v36  ;;  %6766 = vmatpush3.msra.mxu1 %v7775_v51 }
 0xca4   :  { %6736 = vmatprep.subr.mxu0 %v8595_v49  ;;  %6767 = vmatprep.subr.mxu1 %v8595_v49 }
 0xca5   :  { %6737 = vmatpush3.msra.mxu0 %v7780_v55  ;;  %6768 = vmatpush3.msra.mxu1 %v7794_v62 }
 0xca6   :  { %6739 = vmatmul.mubr.f32.vlgmr.msra.gmra.mxu0 %v3042_v60  ;;  %6769 = vmatprep.subr.mxu1 %v8595_v49 }
 0xca7   :  { %6770 = vmatpush3.msra.mxu1 %v7813_v4  ;;  %6752 = vmatprep.subr.mxu0 %v8595_v49 }
 0xca8   :  { %6771 = vmatprep.mubr.msk.f32.mxu1 %vm7229_vm5, %v8595_v49  ;;  %6785 = vmatprep.subr.mxu1 %v8595_v49 }
 0xca9   :  { %6753 = vmatpush3.msra.mxu0 %v7678_v12  ;;  %6760 = vmatprep.mubr.msk.f32.mxu0 %vm7229_vm5, %v8595_v49 }
 0xcaa   :  { %6754 = vmatprep.subr.mxu0 %v8595_v49 }
 0xcab   :  { %6755 = vmatpush3.msra.mxu0 %v7689_v14 }
 0xcac   :  { %6756 = vmatprep.subr.mxu0 %v8595_v49 }
 0xcad   :  { %6757 = vmatpush3.msra.mxu0 %v7708_v22 }
 0xcae   :  { %6758 = vmatprep.subr.mxu0 %v8595_v49 }
 0xcaf   :  { %6759 = vmatpush3.msra.mxu0 %v7734_v29 }
 0xcb0   :  { %6774 = vmatprep.subr.mxu0 %v8595_v49 }
 0xd4c   :  { %v3139_v61 = vpop.f32.mrf.mxu1 }
 0xd4e   :  { %v6707_v63 = vpop.f32.mrf.mxu1 }
 0xd54   :  { %v3296_v3 = vpop.f32.mrf.mxu1 }
 0xd55   :  { %v3048_v5 = vpop.f32.mrf.mxu0 }
 0xd56   :  { %v6729_v11 = vpop.f32.mrf.mxu1  ;;  %v3140_v38 = vadd.f32 %v3139_v61, %v3048_v5 }
 0xd57   :  { %v6696_v15 = vpop.f32.mrf.mxu0 }
 0xd5d   :  { %v3219_v33 = vpop.f32.mrf.mxu0 }
 0xd5e   :  { %v3454_v35 = vpop.f32.mrf.mxu1  ;;  %v3220_v47 = vadd.f32 %v3219_v33, %v3140_v38 }
 0xd5f   :  { %v6718_v42 = vpop.f32.mrf.mxu0 }
 0xd60   :  { %v6751_v46 = vpop.f32.mrf.mxu1  ;;  %v3297_v54 = vadd.f32 %v3296_v3, %v3220_v47 }
 0xd66   :  { %v3379_v39 = vpop.f32.mrf.mxu0 }
 0xd67   :  { %v3380_v40 = vadd.f32 %v3379_v39, %v3297_v54 }
 0xd68   :  { %v6740_v43 = vpop.f32.mrf.mxu0 }
 0xd69   :  { %v3455_v58 = vadd.f32 %v3454_v35, %v3380_v40 }
 0xd6b   :  { %v3458_v0 = vadd.f32 %v3455_v58, %v7904_v56 }
 0xd6d   :  { %v5781_v2 = vmul.f32 -1.442695, %v3458_v0 }
 0xd6f   :  { %7082 = vpow2.f32 %v5781_v2 }
 0xd70   :  { %7084 = vtanh.f32 %v3458_v0 }
 0xd7c   :  { %v7083_v10 = vpop.eup %7082 }
 0xd7d   :  { %v3462_v16 = vadd.f32 1.0, %v7083_v10  ;;  %v7085_v41 = vpop.eup %7084 }
 0xd7f   :  { %7086 = vrcp.f32 %v3462_v16 }
 0xd8c   :  { %v7087_v59 = vpop.eup %7086 }
 0xd8d   :  { %v3466_v17 = vsel %vm7911_vm8, %v7085_v41, %v7087_v59 }
 0xd8e   :  { %3472 = vrot.lane.b32.xlu1 %v3466_v17, %s7231_s6  ;;  %v3470_v23 = vmul.f32 %v3468_v9, %v3466_v17 }
 0xe00   :  { %v3473_v53 = vpop.permute.xlu1 %3472 }
 0xe01   :  { %v3475_v6 = vmul.f32 %v3473_v53, %v3466_v17 }
 0xe03   :  { %3477 = vrot.lane.b32.xlu0 %v3475_v6, %s7230_s17 }
 0xe75   :  { %v3478_v45 = vpop.permute.xlu0 %3477 }
 0xe76   :  { %v8219_v7 = vadd.f32 %v3478_v45, %v3470_v23 }
 0xe78   :  { %7088 = vtanh.f32 %v8219_v7  ;;  %v3990_v23 = vrot.slane %v8219_v7, 4 }
 0xe85   :  { %v7089_v8 = vpop.eup %7088 }
 0xe86   :  { %3483 = vrot.lane.b32.xlu1 %v7089_v8, %s7231_s6 }
 0xef8   :  { %v3484_v30 = vpop.permute.xlu1 %3483 }
 0xef9   :  { %v8223_v32 = vmul.f32 %v3484_v30, %v3466_v17 }
 0xefb   :  { %3488 = vrot.lane.b32.xlu0 %v8223_v32, %s7230_s17 }
 0xf6d   :  { %v3489_v18 = vpop.permute.xlu0 %3488 }
 0xf6e   :  { %v3490_v60 = vsel %vm884_vm4, %v3489_v18, 0 }
 0xf6f   :  { %v3561_v31 = vand.u32 4294901760, %v3490_v60 }
 0xf71   :  { %v3562_v1 = vsub.f32 %v3490_v60, %v3561_v31  ;;  %6772 = vmatmul.mubr.f32.vlgmr.msra.gmra.mxu1 %v3561_v31 }
 0xf72   :  { %6786 = vmatpush3.msra.mxu1 %v7678_v12  ;;  %6793 = vmatprep.mubr.msk.f32.mxu1 %vm7229_vm5, %v8595_v49 }
 0xf73   :  { %v3563_v48 = vand.u32 4294901760, %v3562_v1  ;;  %6787 = vmatprep.subr.mxu1 %v8595_v49 }
 0xf74   :  { %6788 = vmatpush3.msra.mxu1 %v7689_v14 }
 0xf75   :  { %v3564_v52 = vsub.f32 %v3562_v1, %v3563_v48  ;;  %6789 = vmatprep.subr.mxu1 %v8595_v49 }
 0xf76   :  { %6790 = vmatpush3.msra.mxu1 %v7708_v22 }
 0xf77   :  { %v3565_v57 = vand.u32 4294901760, %v3564_v52  ;;  %6791 = vmatprep.subr.mxu1 %v8595_v49 }
 0xf78   :  { %6792 = vmatpush3.msra.mxu1 %v7734_v29 }
 0xf79   :  { %6794 = vmatmul.mubr.f32.vlgmr.msra.gmra.mxu1 %v3563_v48  ;;  %6807 = vmatprep.subr.mxu1 %v8595_v49 }
 0xf7a   :  { %6761 = vmatmul.mubr.f32.vlgmr.msra.gmra.mxu0 %v3565_v57  ;;  %6808 = vmatpush3.msra.mxu1 %v7678_v12 }
 0xf7b   :  { %6775 = vmatpush3.msra.mxu0 %v7694_v19  ;;  %6809 = vmatprep.subr.mxu1 %v8595_v49 }
 0xf7c   :  { %6776 = vmatprep.subr.mxu0 %v8595_v49  ;;  %6810 = vmatpush3.msra.mxu1 %v7689_v14 }
 0xf7d   :  { %6777 = vmatpush3.msra.mxu0 %v7706_v21  ;;  %6811 = vmatprep.subr.mxu1 %v8595_v49 }
 0xf7e   :  { %6778 = vmatprep.subr.mxu0 %v8595_v49  ;;  %6812 = vmatpush3.msra.mxu1 %v7708_v22 }
 0xf7f   :  { %6779 = vmatpush3.msra.mxu0 %v7732_v28  ;;  %6813 = vmatprep.subr.mxu1 %v8595_v49 }
 0xf80   :  { %6780 = vmatprep.subr.mxu0 %v8595_v49  ;;  %6782 = vmatprep.mubr.msk.f32.mxu0 %vm7229_vm5, %v8595_v49 }
 0xf81   :  { %6781 = vmatpush3.msra.mxu0 %v7754_v37  ;;  %6814 = vmatpush3.msra.mxu1 %v7734_v29 }
 0xf82   :  { %6815 = vmatprep.mubr.msk.f32.mxu1 %vm7229_vm5, %v8595_v49  ;;  %6783 = vmatmul.mubr.f32.vlgmr.msra.gmra.mxu0 %v3562_v1 }
 0xf83   :  { %6796 = vmatprep.subr.mxu0 %v8595_v49  ;;  %6816 = vmatmul.mubr.f32.vlgmr.msra.gmra.mxu1 %v3561_v31 }
 0xf84   :  { %6797 = vmatpush3.msra.mxu0 %v7716_v24  ;;  %6804 = vmatprep.mubr.msk.f32.mxu0 %vm7229_vm5, %v8595_v49 }
 0xf85   :  { %6798 = vmatprep.subr.mxu0 %v8595_v49  ;;  %6829 = vmatprep.subr.mxu1 %v8595_v49 }
 0xf86   :  { %6799 = vmatpush3.msra.mxu0 %v7729_v27  ;;  %6830 = vmatpush3.msra.mxu1 %v7758_v44 }
 0xf87   :  { %6800 = vmatprep.subr.mxu0 %v8595_v49  ;;  %6831 = vmatprep.subr.mxu1 %v8595_v49 }
 0xf88   :  { %6801 = vmatpush3.msra.mxu0 %v7751_v36  ;;  %6832 = vmatpush3.msra.mxu1 %v7775_v51 }
 0xf89   :  { %6802 = vmatprep.subr.mxu0 %v8595_v49  ;;  %6833 = vmatprep.subr.mxu1 %v8595_v49 }
 0xf8a   :  { %6803 = vmatpush3.msra.mxu0 %v7780_v55  ;;  %6834 = vmatpush3.msra.mxu1 %v7794_v62 }
 0xf8b   :  { %6805 = vmatmul.mubr.f32.vlgmr.msra.gmra.mxu0 %v3561_v31  ;;  %6835 = vmatprep.subr.mxu1 %v8595_v49 }
 0xf8c   :  { %6836 = vmatpush3.msra.mxu1 %v7813_v4  ;;  %6818 = vmatprep.subr.mxu0 %v8595_v49 }
 0xf8d   :  { %6837 = vmatprep.mubr.msk.f32.mxu1 %vm7229_vm5, %v8595_v49  ;;  %6851 = vmatprep.subr.mxu1 %v8595_v49 }
 0xf8e   :  { %6819 = vmatpush3.msra.mxu0 %v7678_v12  ;;  %6826 = vmatprep.mubr.msk.f32.mxu0 %vm7229_vm5, %v8595_v49 }
 0xf8f   :  { %6820 = vmatprep.subr.mxu0 %v8595_v49 }
 0xf90   :  { %6821 = vmatpush3.msra.mxu0 %v7689_v14 }
 0xf91   :  { %6822 = vmatprep.subr.mxu0 %v8595_v49 }
 0xf92   :  { %6823 = vmatpush3.msra.mxu0 %v7708_v22 }
 0xf93   :  { %6824 = vmatprep.subr.mxu0 %v8595_v49 }
 0xf94   :  { %6825 = vmatpush3.msra.mxu0 %v7734_v29 }
 0xf95   :  { %6840 = vmatprep.subr.mxu0 %v8595_v49 }
0x1031   :  { %v3658_v61 = vpop.f32.mrf.mxu1 }
0x1033   :  { %v6773_v63 = vpop.f32.mrf.mxu1 }
0x1039   :  { %v3815_v3 = vpop.f32.mrf.mxu1 }
0x103a   :  { %v3567_v5 = vpop.f32.mrf.mxu0 }
0x103b   :  { %v6795_v11 = vpop.f32.mrf.mxu1  ;;  %v3659_v38 = vadd.f32 %v3658_v61, %v3567_v5 }
0x103c   :  { %v6762_v15 = vpop.f32.mrf.mxu0 }
0x1042   :  { %v3738_v33 = vpop.f32.mrf.mxu0 }
0x1043   :  { %v3973_v35 = vpop.f32.mrf.mxu1  ;;  %v3739_v47 = vadd.f32 %v3738_v33, %v3659_v38 }
0x1044   :  { %v6784_v42 = vpop.f32.mrf.mxu0 }
0x1045   :  { %v6817_v46 = vpop.f32.mrf.mxu1  ;;  %v3816_v54 = vadd.f32 %v3815_v3, %v3739_v47 }
0x104b   :  { %v3898_v39 = vpop.f32.mrf.mxu0 }
0x104c   :  { %v3899_v40 = vadd.f32 %v3898_v39, %v3816_v54 }
0x104d   :  { %v6806_v43 = vpop.f32.mrf.mxu0 }
0x104e   :  { %v3974_v58 = vadd.f32 %v3973_v35, %v3899_v40 }
0x1050   :  { %v3978_v0 = vrot.slane %v3974_v58, 4 }
0x1052   :  { %v3980_v2 = vadd.f32 %v3978_v0, %v7904_v56 }
0x1054   :  { %v5782_v10 = vmul.f32 -1.442695, %v3980_v2 }
0x1056   :  { %7090 = vpow2.f32 %v5782_v10 }
0x1057   :  { %7092 = vtanh.f32 %v3980_v2 }
0x1063   :  { %v7091_v16 = vpop.eup %7090 }
0x1064   :  { %v3984_v41 = vadd.f32 1.0, %v7091_v16  ;;  %v7093_v59 = vpop.eup %7092 }
0x1066   :  { %7094 = vrcp.f32 %v3984_v41 }
0x1073   :  { %v7095_v17 = vpop.eup %7094 }
0x1074   :  { %v3988_v53 = vsel %vm7911_vm8, %v7093_v59, %v7095_v17 }
0x1075   :  { %3994 = vrot.lane.b32.xlu1 %v3988_v53, %s7231_s6  ;;  %v3992_v56 = vmul.f32 %v3990_v23, %v3988_v53 }
0x10e7   :  { %v3995_v6 = vpop.permute.xlu1 %3994 }
0x10e8   :  { %v3997_v9 = vmul.f32 %v3995_v6, %v3988_v53 }
0x10ea   :  { %3999 = vrot.lane.b32.xlu0 %v3997_v9, %s7230_s17 }
0x115c   :  { %v4000_v45 = vpop.permute.xlu0 %3999 }
0x115d   :  { %v8294_v8 = vadd.f32 %v4000_v45, %v3992_v56 }
0x115f   :  { %7096 = vtanh.f32 %v8294_v8 }
0x116c   :  { %v7097_v30 = vpop.eup %7096 }
0x116d   :  { %4005 = vrot.lane.b32.xlu1 %v7097_v30, %s7231_s6 }
0x11df   :  { %v4006_v18 = vpop.permute.xlu1 %4005 }
0x11e0   :  { %v8298_v60 = vmul.f32 %v4006_v18, %v3988_v53  ;;  %v4510_v53 = vrot.slane %v8294_v8, 4 }
0x11e2   :  { %v4010_v31 = vrot.slane %v8298_v60, 4  ;;  %v5065_v50 = vsel %vm5062_vm9, %v8223_v32, %v8298_v60  ;;  %v5069_v32 = vld [vmem:[#allocation5 + $0x10] sm:$0xff] }
0x11e3   :  { %v8445_v60 = vand.u32 4294901760, %v5069_v32 }
0x11e4   :  { %4011 = vrot.lane.b32.xlu0 %v4010_v31, %s7230_s17 }
0x1256   :  { %v4012_v1 = vpop.permute.xlu0 %4011 }
0x1257   :  { %v4013_v48 = vsel %vm884_vm4, %v4012_v1, 0 }
0x1258   :  { %v4084_v7 = vand.u32 4294901760, %v4013_v48 }
0x125a   :  { %v4085_v52 = vsub.f32 %v4013_v48, %v4084_v7  ;;  %6838 = vmatmul.mubr.f32.vlgmr.msra.gmra.mxu1 %v4084_v7 }
0x125b   :  { %6852 = vmatpush3.msra.mxu1 %v7678_v12  ;;  %6859 = vmatprep.mubr.msk.f32.mxu1 %vm7229_vm5, %v8595_v49 }
0x125c   :  { %v4086_v57 = vand.u32 4294901760, %v4085_v52  ;;  %6853 = vmatprep.subr.mxu1 %v8595_v49 }
0x125d   :  { %6854 = vmatpush3.msra.mxu1 %v7689_v14 }
0x125e   :  { %v4087_v61 = vsub.f32 %v4085_v52, %v4086_v57  ;;  %6855 = vmatprep.subr.mxu1 %v8595_v49 }
0x125f   :  { %6856 = vmatpush3.msra.mxu1 %v7708_v22 }
0x1260   :  { %v4088_v63 = vand.u32 4294901760, %v4087_v61  ;;  %6857 = vmatprep.subr.mxu1 %v8595_v49 }
0x1261   :  { %6858 = vmatpush3.msra.mxu1 %v7734_v29 }
0x1262   :  { %6860 = vmatmul.mubr.f32.vlgmr.msra.gmra.mxu1 %v4086_v57  ;;  %6873 = vmatprep.subr.mxu1 %v8595_v49 }
0x1263   :  { %6827 = vmatmul.mubr.f32.vlgmr.msra.gmra.mxu0 %v4088_v63  ;;  %6874 = vmatpush3.msra.mxu1 %v7678_v12 }
0x1264   :  { %6841 = vmatpush3.msra.mxu0 %v7694_v19  ;;  %6875 = vmatprep.subr.mxu1 %v8595_v49 }
0x1265   :  { %6842 = vmatprep.subr.mxu0 %v8595_v49  ;;  %6876 = vmatpush3.msra.mxu1 %v7689_v14 }
0x1266   :  { %6843 = vmatpush3.msra.mxu0 %v7706_v21  ;;  %6877 = vmatprep.subr.mxu1 %v8595_v49 }
0x1267   :  { %6844 = vmatprep.subr.mxu0 %v8595_v49  ;;  %6878 = vmatpush3.msra.mxu1 %v7708_v22 }
0x1268   :  { %6845 = vmatpush3.msra.mxu0 %v7732_v28  ;;  %6879 = vmatprep.subr.mxu1 %v8595_v49 }
0x1269   :  { %6846 = vmatprep.subr.mxu0 %v8595_v49  ;;  %6848 = vmatprep.mubr.msk.f32.mxu0 %vm7229_vm5, %v8595_v49 }
0x126a   :  { %6847 = vmatpush3.msra.mxu0 %v7754_v37  ;;  %6880 = vmatpush3.msra.mxu1 %v7734_v29 }
0x126b   :  { %6881 = vmatprep.mubr.msk.f32.mxu1 %vm7229_vm5, %v8595_v49  ;;  %6849 = vmatmul.mubr.f32.vlgmr.msra.gmra.mxu0 %v4085_v52 }
0x126c   :  { %6862 = vmatprep.subr.mxu0 %v8595_v49  ;;  %6882 = vmatmul.mubr.f32.vlgmr.msra.gmra.mxu1 %v4084_v7 }
0x126d   :  { %6863 = vmatpush3.msra.mxu0 %v7716_v24  ;;  %6870 = vmatprep.mubr.msk.f32.mxu0 %vm7229_vm5, %v8595_v49 }
0x126e   :  { %6864 = vmatprep.subr.mxu0 %v8595_v49  ;;  %6895 = vmatprep.subr.mxu1 %v8595_v49 }
0x126f   :  { %6865 = vmatpush3.msra.mxu0 %v7729_v27  ;;  %6896 = vmatpush3.msra.mxu1 %v7758_v44 }
0x1270   :  { %6866 = vmatprep.subr.mxu0 %v8595_v49  ;;  %6897 = vmatprep.subr.mxu1 %v8595_v49 }
0x1271   :  { %6867 = vmatpush3.msra.mxu0 %v7751_v36  ;;  %6898 = vmatpush3.msra.mxu1 %v7775_v51 }
0x1272   :  { %6868 = vmatprep.subr.mxu0 %v8595_v49  ;;  %6899 = vmatprep.subr.mxu1 %v8595_v49 }
0x1273   :  { %6869 = vmatpush3.msra.mxu0 %v7780_v55  ;;  %6900 = vmatpush3.msra.mxu1 %v7794_v62 }
0x1274   :  { %6871 = vmatmul.mubr.f32.vlgmr.msra.gmra.mxu0 %v4084_v7  ;;  %6901 = vmatprep.subr.mxu1 %v8595_v49 }
0x1275   :  { %6902 = vmatpush3.msra.mxu1 %v7813_v4  ;;  %6884 = vmatprep.subr.mxu0 %v8595_v49 }
0x1276   :  { %6903 = vmatprep.mubr.msk.f32.mxu1 %vm7229_vm5, %v8595_v49  ;;  %6917 = vmatprep.subr.mxu1 %v8595_v49 }
0x1277   :  { %6885 = vmatpush3.msra.mxu0 %v7678_v12  ;;  %6892 = vmatprep.mubr.msk.f32.mxu0 %vm7229_vm5, %v8595_v49 }
0x1278   :  { %6886 = vmatprep.subr.mxu0 %v8595_v49 }
0x1279   :  { %6887 = vmatpush3.msra.mxu0 %v7689_v14 }
0x127a   :  { %6888 = vmatprep.subr.mxu0 %v8595_v49 }
0x127b   :  { %6889 = vmatpush3.msra.mxu0 %v7708_v22 }
0x127c   :  { %6890 = vmatprep.subr.mxu0 %v8595_v49 }
0x127d   :  { %6891 = vmatpush3.msra.mxu0 %v7734_v29 }
0x127e   :  { %6906 = vmatprep.subr.mxu0 %v8595_v49 }
0x131a   :  { %v4181_v44 = vpop.f32.mrf.mxu1 }
0x131c   :  { %v6839_v51 = vpop.f32.mrf.mxu1 }
0x1322   :  { %v4338_v62 = vpop.f32.mrf.mxu1 }
0x1323   :  { %v4090_v4 = vpop.f32.mrf.mxu0 }
0x1324   :  { %v6861_v3 = vpop.f32.mrf.mxu1  ;;  %v4182_v33 = vadd.f32 %v4181_v44, %v4090_v4 }
0x1325   :  { %v6828_v5 = vpop.f32.mrf.mxu0 }
0x132b   :  { %v4261_v11 = vpop.f32.mrf.mxu0 }
0x132c   :  { %v4496_v15 = vpop.f32.mrf.mxu1  ;;  %v4262_v42 = vadd.f32 %v4261_v11, %v4182_v33 }
0x132d   :  { %v6850_v35 = vpop.f32.mrf.mxu0 }
0x132e   :  { %v6883_v38 = vpop.f32.mrf.mxu1  ;;  %v4339_v46 = vadd.f32 %v4338_v62, %v4262_v42  ;;  %v5070_v42 = vld [vmem:[#allocation5 + $0x18] sm:$0xff] }
0x1334   :  { %v4421_v47 = vpop.f32.mrf.mxu0 }
0x1335   :  { %v4422_v54 = vadd.f32 %v4421_v47, %v4339_v46  ;;  %v8433_v46 = vand.u32 4294901760, %v5070_v42 }
0x1336   :  { %v6872_v39 = vpop.f32.mrf.mxu0 }
0x1337   :  { %v4497_v40 = vadd.f32 %v4496_v15, %v4422_v54  ;;  %v8436_v47 = vsub.f32 %v5070_v42, %v8433_v46  ;;  %v5068_v39 = vld [vmem:[#allocation5 + $0x8] sm:$0xff] }
0x1339   :  { %v4500_v43 = vadd.f32 %v4497_v40, %v7902_v34 }
0x133b   :  { %v5783_v58 = vmul.f32 -1.442695, %v4500_v43 }
0x133d   :  { %7098 = vpow2.f32 %v5783_v58  ;;  %v8451_v58 = vand.u32 4294901760, %v5068_v39 }
0x133e   :  { %7100 = vtanh.f32 %v4500_v43  ;;  %v8449_v43 = vsub.f32 %v5069_v32, %v8445_v60 }
0x134a   :  { %v7099_v0 = vpop.eup %7098 }
0x134b   :  { %v4504_v2 = vadd.f32 1.0, %v7099_v0  ;;  %v7101_v10 = vpop.eup %7100  ;;  %v5067_v0 = vld [vmem:[#allocation5] sm:$0xff] }
0x134d   :  { %7102 = vrcp.f32 %v4504_v2 }
0x135a   :  { %v7103_v16 = vpop.eup %7102 }
0x135b   :  { %v4508_v41 = vsel %vm7911_vm8, %v7101_v10, %v7103_v16  ;;  %v8457_v10 = vand.u32 4294901760, %v8449_v43  ;;  %v8460_v16 = vsub.f32 %v5068_v39, %v8451_v58 }
0x135c   :  { %4514 = vrot.lane.b32.xlu1 %v4508_v41, %s7231_s6  ;;  %v4512_v6 = vmul.f32 %v4510_v53, %v4508_v41 }
0x135d   :  { %v5242_v53 = vsub.f32 %v8449_v43, %v8457_v10 }
0x13ce   :  { %v4515_v59 = vpop.permute.xlu1 %4514 }
0x13cf   :  { %v4517_v17 = vmul.f32 %v4515_v59, %v4508_v41 }
0x13d1   :  { %4519 = vrot.lane.b32.xlu0 %v4517_v17, %s7230_s17 }
0x1443   :  { %v4520_v9 = vpop.permute.xlu0 %4519 }
0x1444   :  { %v8369_v23 = vadd.f32 %v4520_v9, %v4512_v6  ;;  %v8469_v6 = vand.u32 4294901760, %v8460_v16 }
0x1446   :  { %7104 = vtanh.f32 %v8369_v23  ;;  %v5032_v40 = vrot.slane %v8369_v23, 4  ;;  %v5243_v23 = vand.u32 4294901760, %v5242_v53 }
0x1453   :  { %v7105_v56 = vpop.eup %7104 }
0x1454   :  { %4525 = vrot.lane.b32.xlu1 %v7105_v56, %s7231_s6  ;;  %v5249_v56 = vsub.f32 %v8460_v16, %v8469_v6 }
0x14c6   :  { %v4526_v45 = vpop.permute.xlu1 %4525 }
0x14c7   :  { %v8373_v30 = vmul.f32 %v4526_v45, %v4508_v41  ;;  %v8462_v41 = vand.u32 4294901760, %v5067_v0 }
0x14c9   :  { %4530 = vrot.lane.b32.xlu0 %v8373_v30, %s7230_s17  ;;  %v8472_v9 = vsub.f32 %v5067_v0, %v8462_v41 }
0x14cb   :  { %v8479_v45 = vand.u32 4294901760, %v8472_v9 }
0x153b   :  { %v4531_v18 = vpop.permute.xlu0 %4530 }
0x153c   :  { %v4532_v31 = vsel %vm884_vm4, %v4531_v18, 0 }
0x153d   :  { %v4603_v1 = vand.u32 4294901760, %v4532_v31 }
0x153f   :  { %v4604_v8 = vsub.f32 %v4532_v31, %v4603_v1  ;;  %6904 = vmatmul.mubr.f32.vlgmr.msra.gmra.mxu1 %v4603_v1 }
0x1540   :  { %6918 = vmatpush3.msra.mxu1 %v7678_v12  ;;  %6925 = vmatprep.mubr.msk.f32.mxu1 %vm7229_vm5, %v8595_v49 }
0x1541   :  { %v4605_v48 = vand.u32 4294901760, %v4604_v8  ;;  %6919 = vmatprep.subr.mxu1 %v8595_v49 }
0x1542   :  { %6920 = vmatpush3.msra.mxu1 %v7689_v14 }
0x1543   :  { %v4606_v7 = vsub.f32 %v4604_v8, %v4605_v48  ;;  %6921 = vmatprep.subr.mxu1 %v8595_v49 }
0x1544   :  { %6922 = vmatpush3.msra.mxu1 %v7708_v22 }
0x1545   :  { %v4607_v52 = vand.u32 4294901760, %v4606_v7  ;;  %6923 = vmatprep.subr.mxu1 %v8595_v49 }
0x1546   :  { %6924 = vmatpush3.msra.mxu1 %v7734_v29 }
0x1547   :  { %6926 = vmatmul.mubr.f32.vlgmr.msra.gmra.mxu1 %v4605_v48  ;;  %6939 = vmatprep.subr.mxu1 %v8595_v49 }
0x1548   :  { %6893 = vmatmul.mubr.f32.vlgmr.msra.gmra.mxu0 %v4607_v52  ;;  %6940 = vmatpush3.msra.mxu1 %v7678_v12 }
0x1549   :  { %6907 = vmatpush3.msra.mxu0 %v7694_v19  ;;  %6941 = vmatprep.subr.mxu1 %v8595_v49 }
0x154a   :  { %6908 = vmatprep.subr.mxu0 %v8595_v49  ;;  %6942 = vmatpush3.msra.mxu1 %v7689_v14 }
0x154b   :  { %6909 = vmatpush3.msra.mxu0 %v7706_v21  ;;  %6943 = vmatprep.subr.mxu1 %v8595_v49 }
0x154c   :  { %6910 = vmatprep.subr.mxu0 %v8595_v49  ;;  %6944 = vmatpush3.msra.mxu1 %v7708_v22 }
0x154d   :  { %6911 = vmatpush3.msra.mxu0 %v7732_v28  ;;  %6945 = vmatprep.subr.mxu1 %v8595_v49 }
0x154e   :  { %6912 = vmatprep.subr.mxu0 %v8595_v49  ;;  %6914 = vmatprep.mubr.msk.f32.mxu0 %vm7229_vm5, %v8595_v49 }
0x154f   :  { %6913 = vmatpush3.msra.mxu0 %v7754_v37  ;;  %6946 = vmatpush3.msra.mxu1 %v7734_v29 }
0x1550   :  { %6947 = vmatprep.mubr.msk.f32.mxu1 %vm7229_vm5, %v8595_v49  ;;  %6915 = vmatmul.mubr.f32.vlgmr.msra.gmra.mxu0 %v4604_v8  ;;  %v5256_v8 = vsub.f32 %v8472_v9, %v8479_v45 }
0x1551   :  { %6928 = vmatprep.subr.mxu0 %v8595_v49  ;;  %6948 = vmatmul.mubr.f32.vlgmr.msra.gmra.mxu1 %v4603_v1 }
0x1552   :  { %6929 = vmatpush3.msra.mxu0 %v7716_v24  ;;  %6936 = vmatprep.mubr.msk.f32.mxu0 %vm7229_vm5, %v8595_v49  ;;  %v5257_v7 = vand.u32 4294901760, %v5256_v8 }
0x1553   :  { %6930 = vmatprep.subr.mxu0 %v8595_v49 }
0x1554   :  { %6931 = vmatpush3.msra.mxu0 %v7729_v27 }
0x1555   :  { %6932 = vmatprep.subr.mxu0 %v8595_v49 }
0x1556   :  { %6933 = vmatpush3.msra.mxu0 %v7751_v36 }
0x1557   :  { %6934 = vmatprep.subr.mxu0 %v8595_v49 }
0x1558   :  { %6935 = vmatpush3.msra.mxu0 %v7780_v55 }
0x1559   :  { %6937 = vmatmul.mubr.f32.vlgmr.msra.gmra.mxu0 %v4603_v1  ;;  %6950 = vmatprep.subr.mxu0 %v8433_v46  ;;  %v5250_v1 = vand.u32 4294901760, %v5249_v56 }
0x155a   :  { %6951 = vmatpush3.msra.mxu0 %v8433_v46 }
0x155b   :  { %6952 = vmatprep.subr.mxu0 %v8445_v60 }
0x155c   :  { %6953 = vmatpush3.msra.mxu0 %v8445_v60 }
0x155d   :  { %6954 = vmatprep.subr.mxu0 %v8451_v58 }
0x155e   :  { %6955 = vmatpush3.msra.mxu0 %v8451_v58 }
0x155f   :  { %6956 = vmatprep.subr.mxu0 %v8462_v41 }
0x1560   :  { %6957 = vmatpush3.msra.mxu0 %v8462_v41 }
0x1561   :  { %6978 = vmatprep.subr.mxu0 %v8436_v47 }
0x15ff   :  { %v4700_v12 = vpop.f32.mrf.mxu1 }
0x1601   :  { %v6905_v14 = vpop.f32.mrf.mxu1 }
0x1607   :  { %v4857_v19 = vpop.f32.mrf.mxu1 }
0x1608   :  { %v4609_v21 = vpop.f32.mrf.mxu0 }
0x1609   :  { %v6927_v22 = vpop.f32.mrf.mxu1  ;;  %v4701_v37 = vadd.f32 %v4700_v12, %v4609_v21 }
0x160a   :  { %v6894_v24 = vpop.f32.mrf.mxu0  ;;  %v5064_v22 = vsel %vm5062_vm9, %v8073_v25, %v8148_v26 }
0x1610   :  { %v4780_v28 = vpop.f32.mrf.mxu0 }
0x1611   :  { %v5015_v29 = vpop.f32.mrf.mxu1  ;;  %v4781_v61 = vadd.f32 %v4780_v28, %v4701_v37 }
0x1612   :  { %v6916_v57 = vpop.f32.mrf.mxu0 }
0x1613   :  { %v6949_v27 = vpop.f32.mrf.mxu1  ;;  %v4858_v63 = vadd.f32 %v4857_v19, %v4781_v61 }
0x1619   :  { %v4940_v44 = vpop.f32.mrf.mxu0 }
0x161a   :  { %v4941_v36 = vadd.f32 %v4940_v44, %v4858_v63 }
0x161b   :  { %v6938_v51 = vpop.f32.mrf.mxu0 }
0x161c   :  { %v5016_v49 = vadd.f32 %v5015_v29, %v4941_v36 }
0x161e   :  { %v5020_v62 = vrot.slane %v5016_v49, 4 }
0x1620   :  { %v5022_v55 = vadd.f32 %v5020_v62, %v7902_v34  ;;  %v5063_v34 = vsel %vm5062_vm9, %v7923_v20, %v7998_v13  ;;  %v8441_v20 = vand.u32 4294901760, %v8436_v47 }
0x1622   :  { %v5784_v4 = vmul.f32 -1.442695, %v5022_v55  ;;  %v5235_v13 = vsub.f32 %v8436_v47, %v8441_v20 }
0x1624   :  { %7106 = vpow2.f32 %v5784_v4  ;;  %v5236_v54 = vand.u32 4294901760, %v5235_v13 }
0x1625   :  { %7108 = vtanh.f32 %v5022_v55 }
0x1626   :  { %6964 = vmatprep.subr.mxu1 %v5236_v54 }
0x1627   :  { %6965 = vmatpush3.msra.mxu1 %v5236_v54 }
0x1628   :  { %6966 = vmatprep.subr.mxu1 %v5243_v23 }
0x1629   :  { %6967 = vmatpush3.msra.mxu1 %v5243_v23 }
0x162a   :  { %6968 = vmatprep.subr.mxu1 %v5250_v1 }
0x162b   :  { %6969 = vmatpush3.msra.mxu1 %v5250_v1 }
0x162c   :  { %6970 = vmatprep.subr.mxu1 %v5257_v7 }
0x162d   :  { %6971 = vmatpush3.msra.mxu1 %v5257_v7 }
0x162e   :  { %6992 = vmatprep.subr.mxu1 %v8433_v46 }
0x1631   :  { %v7107_v3 = vpop.eup %7106 }
0x1632   :  { %v5026_v5 = vadd.f32 1.0, %v7107_v3  ;;  %v7109_v11 = vpop.eup %7108 }
0x1634   :  { %7110 = vrcp.f32 %v5026_v5 }
0x1641   :  { %v7111_v15 = vpop.eup %7110 }
0x1642   :  { %v8419_v33 = vsel %vm7911_vm8, %v7109_v11, %v7111_v15 }
0x1643   :  { %5036 = vrot.lane.b32.xlu1 %v8419_v33, %s7231_s6  ;;  %v5034_v2 = vmul.f32 %v5032_v40, %v8419_v33 }
0x16b5   :  { %v5037_v35 = vpop.permute.xlu1 %5036 }
0x16b6   :  { %v5039_v38 = vmul.f32 %v5037_v35, %v8419_v33 }
0x16b8   :  { %5041 = vrot.lane.b32.xlu0 %v5039_v38, %s7230_s17 }
0x16bc   :  { %5082 = vrot.lane.b32.xlu0 %v5063_v34, %s7230_s17 }
0x16c0   :  { %5086 = vrot.lane.b32.xlu0 %v5065_v50, %s7230_s17 }
0x172a   :  { %v5042_v59 = vpop.permute.xlu0 %5041 }
0x172b   :  { %v5044_v17 = vadd.f32 %v5042_v59, %v5034_v2 }
0x172d   :  { %7112 = vtanh.f32 %v5044_v17 }
0x172e   :  { %v5083_v18 = vpop.permute.xlu0 %5082 }
0x172f   :  { %v5090_v31 = vsel %vm884_vm4, %v5083_v18, 0 }
0x1730   :  { %v8485_v48 = vand.u32 4294901760, %v5090_v31 }
0x1732   :  { %v8488_v52 = vsub.f32 %v5090_v31, %v8485_v48  ;;  %6972 = vmatprep.mubr.f32.mxu1 %v8485_v48  ;;  %v5087_v24 = vpop.permute.xlu0 %5086 }
0x1733   :  { %v5094_v28 = vsel %vm884_vm4, %v5087_v24, 0 }
0x1734   :  { %v5169_v12 = vand.u32 4294901760, %v8488_v52  ;;  %v8500_v29 = vand.u32 4294901760, %v5094_v28 }
0x1736   :  { %v5170_v14 = vsub.f32 %v8488_v52, %v5169_v12  ;;  %v8504_v27 = vsub.f32 %v5094_v28, %v8500_v29 }
0x1738   :  { %v5171_v19 = vand.u32 4294901760, %v5170_v14  ;;  %v5189_v44 = vand.u32 4294901760, %v8504_v27 }
0x173a   :  { %v7113_v21 = vpop.eup %7112  ;;  %6958 = vmatprep.mubr.f32.mxu0 %v5171_v19  ;;  %v5190_v51 = vsub.f32 %v8504_v27, %v5189_v44 }
0x173b   :  { %5047 = vrot.lane.b32.xlu1 %v7113_v21, %s7231_s6 }
0x173c   :  { %v5191_v55 = vand.u32 4294901760, %v5190_v51 }
0x173f   :  { %5084 = vrot.lane.b32.xlu1 %v5064_v22, %s7230_s17 }
0x17ad   :  { %v5048_v37 = vpop.permute.xlu1 %5047 }
0x17ae   :  { %v5050_v57 = vmul.f32 %v5048_v37, %v8419_v33 }
0x17b0   :  { %5052 = vrot.lane.b32.xlu0 %v5050_v57, %s7230_s17  ;;  %v5066_v61 = vsel %vm5062_vm9, %v8373_v30, %v5050_v57 }
0x17b1   :  { %5088 = vrot.lane.b32.xlu1 %v5066_v61, %s7230_s17  ;;  %v5085_v25 = vpop.permute.xlu1 %5084 }
0x17b2   :  { %v5092_v26 = vsel %vm884_vm4, %v5085_v25, 0 }
0x17b3   :  { %v8511_v63 = vand.u32 4294901760, %v5092_v26 }
0x17b5   :  { %v5178_v36 = vsub.f32 %v5092_v26, %v8511_v63  ;;  %5058 = vrot.lane.b32.xlu1 %v5044_v17, %s7232_s18  ;;  %6973 = vmatmul.mubr.f32.vlgmr.msra.gmra.mxu1 %v8511_v63 }
0x17b6   :  { %6975 = vmatprep.mubr.f32.mxu1 %v8500_v29  ;;  %6993 = vmatpush3.msra.mxu1 %v8433_v46 }
0x17b7   :  { %v5179_v30 = vand.u32 4294901760, %v5178_v36  ;;  %6994 = vmatprep.subr.mxu1 %v8445_v60 }
0x17b8   :  { %6995 = vmatpush3.msra.mxu1 %v8445_v60 }
0x17b9   :  { %v5180_v49 = vsub.f32 %v5178_v36, %v5179_v30  ;;  %6996 = vmatprep.subr.mxu1 %v8451_v58 }
0x17ba   :  { %6997 = vmatpush3.msra.mxu1 %v8451_v58 }
0x17bb   :  { %v5181_v62 = vand.u32 4294901760, %v5180_v49  ;;  %6998 = vmatprep.subr.mxu1 %v8462_v41 }
0x17bc   :  { %6999 = vmatpush3.msra.mxu1 %v8462_v41 }
0x17bd   :  { %6959 = vmatmul.mubr.f32.vlgmr.msra.gmra.mxu0 %v5181_v62  ;;  %7020 = vmatprep.subr.mxu1 %v8433_v46 }
0x17be   :  { %6961 = vmatprep.mubr.f32.mxu0 %v5191_v55  ;;  %6979 = vmatpush3.msra.mxu0 %v8436_v47 }
0x17bf   :  { %6980 = vmatprep.subr.mxu0 %v8449_v43 }
0x17c0   :  { %6981 = vmatpush3.msra.mxu0 %v8449_v43 }
0x17c1   :  { %6982 = vmatprep.subr.mxu0 %v8460_v16 }
0x17c2   :  { %6983 = vmatpush3.msra.mxu0 %v8460_v16 }
0x17c3   :  { %6984 = vmatprep.subr.mxu0 %v8472_v9 }
0x17c4   :  { %6985 = vmatpush3.msra.mxu0 %v8472_v9 }
0x17c5   :  { %7006 = vmatprep.subr.mxu0 %v8441_v20 }
0x1822   :  { %v5053_v4 = vpop.permute.xlu0 %5052 }
0x1823   :  { %v5089_v3 = vpop.permute.xlu1 %5088  ;;  %5056 = vst.msk [vmem:[#allocation8 - $0x4] sm:$0xf0] %vm5055_vm10, %v5053_v4 }
0x1824   :  { %v5096_v5 = vsel %vm884_vm4, %v5089_v3, 0 }
0x1825   :  { %v5197_v11 = vand.u32 4294901760, %v5096_v5 }
0x1827   :  { %v5198_v15 = vsub.f32 %v5096_v5, %v5197_v11  ;;  %6976 = vmatmul.mubr.f32.gmra.mxu1 %v5197_v11  ;;  %v5059_v33 = vpop.permute.xlu1 %5058 }
0x1828   :  { %5061 = vst.msk [vmem:[#allocation10 - $0x4] sm:$0xf0] %vm5055_vm10, %v5059_v33  ;;  %7000 = vmatprep.mubr.f32.mxu1 %v5169_v12 }
0x1829   :  { %v5199_v35 = vand.u32 4294901760, %v5198_v15 }
0x182b   :  { %7001 = vmatmul.mubr.f32.vlgmr.msra.gmra.mxu1 %v5179_v30  ;;  %v5200_v38 = vsub.f32 %v5198_v15, %v5199_v35 }
0x182c   :  { %7003 = vmatprep.mubr.f32.mxu1 %v5189_v44  ;;  %7021 = vmatpush3.msra.mxu1 %v8433_v46 }
0x182d   :  { %7022 = vmatprep.subr.mxu1 %v8445_v60  ;;  %v5201_v34 = vand.u32 4294901760, %v5200_v38 }
0x182e   :  { %7023 = vmatpush3.msra.mxu1 %v8445_v60 }
0x182f   :  { %6962 = vmatmul.mubr.f32.gmra.mxu0 %v5201_v34  ;;  %7004 = vmatmul.mubr.f32.gmra.mxu1 %v5199_v35 }
0x1830   :  { %7024 = vmatprep.subr.mxu1 %v8451_v58  ;;  %6986 = vmatprep.mubr.f32.mxu0 %v8488_v52 }
0x1831   :  { %7025 = vmatpush3.msra.mxu1 %v8451_v58  ;;  %7028 = vmatprep.mubr.f32.mxu1 %v8485_v48 }
0x1832   :  { %7026 = vmatprep.subr.mxu1 %v8462_v41 }
0x1833   :  { %7027 = vmatpush3.msra.mxu1 %v8462_v41  ;;  %6987 = vmatmul.mubr.f32.vlgmr.msra.gmra.mxu0 %v5178_v36 }
0x1834   :  { %7007 = vmatpush3.msra.mxu0 %v8441_v20  ;;  %7029 = vmatmul.mubr.f32.vlgmr.msra.gmra.mxu1 %v8511_v63 }
0x1835   :  { %6989 = vmatprep.mubr.f32.mxu0 %v8504_v27  ;;  %7008 = vmatprep.subr.mxu0 %v8457_v10 }
0x1836   :  { %7031 = vmatprep.mubr.f32.mxu1 %v8500_v29  ;;  %7009 = vmatpush3.msra.mxu0 %v8457_v10 }
0x1837   :  { %7010 = vmatprep.subr.mxu0 %v8469_v6  ;;  %6990 = vmatmul.mubr.f32.gmra.mxu0 %v5198_v15 }
0x1838   :  { %7011 = vmatpush3.msra.mxu0 %v8469_v6  ;;  %7032 = vmatmul.mubr.f32.gmra.mxu1 %v5197_v11 }
0x1839   :  { %7012 = vmatprep.subr.mxu0 %v8479_v45  ;;  %7014 = vmatprep.mubr.f32.mxu0 %v8485_v48 }
0x183a   :  { %7013 = vmatpush3.msra.mxu0 %v8479_v45 }
0x183b   :  { %7015 = vmatmul.mubr.f32.vlgmr.msra.gmra.mxu0 %v8511_v63 }
0x183c   :  { %7017 = vmatprep.mubr.f32.mxu0 %v8500_v29 }
0x183f   :  { %7018 = vmatmul.mubr.f32.gmra.mxu0 %v5197_v11 }
0x1840   :  { %7165 = shalt.err (!%p7162_p0)
}
0x1841   :  { %5737 = dma.vmem_to_hbm [thread:$0]  %s5735_s20, 64, %s8580_s8, [#allocation9]  }
0x1842   :  { %s7234_s23 = smov [#allocation10]  }
0x1843   :  { %s5744_s24 = sshll.u32 %s7234_s23, 4  ;;  %s5745_s24 = int_to_ptr.vmem [resolvable:$true] %s5744_s24 }
0x1844   :  { %s7174_s25 = scalar_lea.vmem %s5745_s24, 64  ;;  %p7179_p2 = scmp.lt.s32.totalorder %s5745_s24, %s5745_s24 }
0x1845   :  { %p7175_p1 = scmp.ne.s32.totalorder %s5745_s24, %s7174_s25  ;;  %p7180_p3 = scmp.lt.s32.totalorder %s7174_s25, %s7174_s25 }
0x1847   :  { %p7181_p4 = por %p7180_p3, %p7179_p2 }
0x1849   :  { %p7182_p5 = pnand %p7181_p4, %p7175_p1 }
0x184b   :  { %7185 = shalt.err (!%p7182_p5)
}
0x184c   :  { %5747 = dma.vmem_to_hbm [thread:$0]  %s5745_s24, 64, %s8581_s9, [#allocation9]   ;;  %v5785_v54 = vld [vmem:[%s8576_s4] ss:$0 sm:$0xff] }
0x184d   :  { %s7235_s4 = smov [#allocation7]  }
0x184e   :  { %s5721_s9 = sshll.u32 %s7235_s4, 4  ;;  %s5722_s9 = int_to_ptr.vmem [resolvable:$true] %s5721_s9 }
0x184f   :  { %s7194_s27 = scalar_lea.vmem %s5722_s9, 512  ;;  %p7199_p7 = scmp.lt.s32.totalorder %s5722_s9, %s5722_s9 }
0x1850   :  { %p7195_p6 = scmp.ne.s32.totalorder %s5722_s9, %s7194_s27  ;;  %p7200_p8 = scmp.lt.s32.totalorder %s7194_s27, %s7194_s27 }
0x1852   :  { %p7201_p9 = por %p7200_p8, %p7199_p7 }
0x1854   :  { %p7202_p10 = pnand %p7201_p9, %p7195_p6 }
0x1875   :  { %v6974_v50 = vpop.f32.mrf.mxu1 }
0x1877   :  { %v5294_v42 = vpop.f32.mrf.mxu1 }
0x187d   :  { %v6960_v47 = vpop.f32.mrf.mxu0 }
0x187e   :  { %v5184_v43 = vadd.f32 %v6960_v47, %v5785_v54 }
0x187f   :  { %v5173_v32 = vpop.f32.mrf.mxu0 }
0x1880   :  { %v5174_v0 = vadd.f32 %v5785_v54, %v5173_v32  ;;  %v5301_v41 = vadd.f32 %v6974_v50, %v5184_v43 }
0x1882   :  { %v5295_v6 = vadd.f32 %v5294_v42, %v5174_v0 }
0x18e7   :  { %v6977_v46 = vpop.f32.mrf.mxu1 }
0x18e9   :  { %v5306_v20 = vpop.f32.mrf.mxu1 }
0x18eb   :  { %v7002_v13 = vpop.f32.mrf.mxu1 }
0x18ed   :  { %v5490_v60 = vpop.f32.mrf.mxu1 }
0x18ef   :  { %v6963_v39 = vpop.f32.mrf.mxu0  ;;  %v7005_v40 = vpop.f32.mrf.mxu1 }
0x18f0   :  { %v5204_v16 = vadd.f32 %v6963_v39, %v5785_v54 }
0x18f1   :  { %v5193_v58 = vpop.f32.mrf.mxu0  ;;  %v5506_v2 = vpop.f32.mrf.mxu1 }
0x18f2   :  { %v5194_v17 = vadd.f32 %v5785_v54, %v5193_v58  ;;  %v5313_v45 = vadd.f32 %v6977_v46, %v5204_v16 }
0x18f3   :  { %v6988_v10 = vpop.f32.mrf.mxu0 }
0x18f4   :  { %v5400_v53 = vadd.f32 %v6988_v10, %v5301_v41  ;;  %v7030_v9 = vpop.f32.mrf.mxu1  ;;  %v5307_v1 = vadd.f32 %v5306_v20, %v5194_v17 }
0x18f5   :  { %v5392_v59 = vpop.f32.mrf.mxu0 }
0x18f6   :  { %v5393_v56 = vadd.f32 %v5392_v59, %v5295_v6  ;;  %v5499_v8 = vadd.f32 %v7002_v13, %v5400_v53  ;;  %v5690_v48 = vpop.f32.mrf.mxu1 }
0x18f7   :  { %v6991_v23 = vpop.f32.mrf.mxu0 }
0x18f8   :  { %v5414_v31 = vadd.f32 %v6991_v23, %v5313_v45  ;;  %v5491_v14 = vadd.f32 %v5490_v60, %v5393_v56  ;;  %v7033_v28 = vpop.f32.mrf.mxu1 }
0x18f9   :  { %v5406_v18 = vpop.f32.mrf.mxu0 }
0x18fa   :  { %v5407_v52 = vadd.f32 %v5406_v18, %v5307_v1  ;;  %v5515_v24 = vadd.f32 %v7005_v40, %v5414_v31  ;;  %v5702_v63 = vpop.f32.mrf.mxu1 }
0x18fb   :  { %v7016_v7 = vpop.f32.mrf.mxu0 }
0x18fc   :  { %v5604_v12 = vadd.f32 %v7016_v7, %v5499_v8  ;;  %v5507_v27 = vadd.f32 %v5506_v2, %v5407_v52 }
0x18fd   :  { %v5597_v19 = vpop.f32.mrf.mxu0 }
0x18fe   :  { %v5697_v21 = vadd.f32 %v7030_v9, %v5604_v12  ;;  %v5598_v22 = vadd.f32 %v5597_v19, %v5491_v14 }
0x18ff   :  { %v7019_v29 = vpop.f32.mrf.mxu0 }
0x1900   :  { %5713 = vst [vmem:[#allocation7 + $0x8] sm:$0xff] %v5697_v21  ;;  %v5691_v37 = vadd.f32 %v5690_v48, %v5598_v22  ;;  %v5616_v57 = vadd.f32 %v7019_v29, %v5515_v24 }
0x1901   :  { %v5609_v61 = vpop.f32.mrf.mxu0 }
0x1902   :  { %5712 = vst [vmem:[#allocation7] sm:$0xff] %v5691_v37  ;;  %v5709_v25 = vadd.f32 %v7033_v28, %v5616_v57  ;;  %v5610_v26 = vadd.f32 %v5609_v61, %v5507_v27 }
0x1904   :  { %5715 = vst [vmem:[#allocation7 + $0x18] sm:$0xff] %v5709_v25  ;;  %v5703_v44 = vadd.f32 %v5702_v63, %v5610_v26 }
0x1906   :  { %5714 = vst [vmem:[#allocation7 + $0x10] sm:$0xff] %v5703_v44 }
0x1907   :  { %7205 = shalt.err (!%p7202_p10)
}
0x1908   :  { %5727 = dma.vmem_to_hbm [thread:$0]  %s5722_s9, 512, %s8579_s7, [#allocation4], %s7223_s12, %s7223_s12, %s7224_s13  }
0x1909   :  { %7218 = dma.done.wait [#allocation4], 512  }
0x190a   :  { %7219 = vsyncadd [#allocation4], 4294966784 }
0x190b   :  { %7220 = dma.done.wait [#allocation9], 128  }
0x190c   :  { %7221 = vsyncadd [#allocation9], 4294967168 }
0x190d   :  { %5757 = vsyncpa [#allocation3], 1 }
0x190e   :  { %5758 = vsyncpa [#allocation6], 1 }
0x190f   :  { %5759 = vsyncpa [#allocation4], 1 }
0x1910   :  { %5760 = vsyncpa [#allocation9], 1 }

</bundles_post_ra>
